<compile_context>
chip_gen: v5e
topology: v5e:2x2
jax: 0.10.0
libtpu: 0.0.40
codegen_flags: <defaults>
</compile_context>

<pallas_src>
import functools

import jax
import jax.numpy as jnp
from jax.experimental import pallas as pl
from jax.experimental.pallas import tpu as pltpu

NEG_SLOPE = 0.01   # nn.LeakyReLU() default negative_slope
LANE = 128


# --------------------------------- kernel -----------------------------------
def _ggin_kernel(x_ref, a_ref, mask_ref,
                 w_atom_ref, b_atom_ref, w_mp_ref,
                 w_pre_ref, b_pre_ref, w_lbl_ref, b_lbl_ref,
                 pred_ref, *, n_prop_step):
    f32 = jnp.float32
    bf16 = jnp.bfloat16

    x = x_ref[...]                    # (Bt, Np, Fp) bf16
    A = a_ref[...]                    # (Bt, Np, Np) bf16 (0/1 -> exact)
    mask3 = mask_ref[...]             # (Bt, Np, 1)  f32
    Bt, Np, Fp = x.shape
    Hp = w_atom_ref.shape[1]

    # atom_proj: fold batch into the MXU M dimension.
    h = jnp.dot(x.reshape(Bt * Np, Fp), w_atom_ref[...],
                preferred_element_type=f32) + b_atom_ref[...]
    h = h.reshape(Bt, Np, Hp)         # f32 residual accumulator

    # n_prop_step residual message-passing steps (static unroll is fine for
    # small step counts).
    # TODO(synk): switch to lax.fori_loop with a pl.ds index into w_mp_ref if
    # n_prop_step ever grows large (>8) to bound code size / vreg pressure.
    for s in range(n_prop_step):
        hp = jnp.dot(h.reshape(Bt * Np, Hp).astype(bf16), w_mp_ref[s],
                     preferred_element_type=f32).reshape(Bt, Np, Hp)
        # (A + I) @ hp == A @ hp + hp  -- no A_hat materialization.
        msg = jnp.einsum('bnm,bmk->bnk', A, hp.astype(bf16),
                         preferred_element_type=f32) + hp
        h = h + msg * mask3

    # pre_readout_proj + LeakyReLU (f32 elementwise), mask, masked mean.
    node = jnp.dot(h.reshape(Bt * Np, Hp).astype(bf16), w_pre_ref[...],
                   preferred_element_type=f32) + b_pre_ref[...]
    node = jnp.where(node >= 0, node, NEG_SLOPE * node)
    node = node.reshape(Bt, Np, Hp) * mask3

    g = jnp.sum(node, axis=1)                       # (Bt, Hp)
    n_valid = jnp.sum(mask3, axis=1)                # (Bt, 1)
    # mean(node,1)/mean(mask,1) == sum(node,1)/sum(mask,1); guard empty graphs.
    g = g * pl.reciprocal(jnp.maximum(n_valid, 1.0), approx=True)

    pred = jnp.dot(g.astype(bf16), w_lbl_ref[...],
                   preferred_element_type=f32) + b_lbl_ref[...]
    pred_ref[...] = pred[None].astype(pred_ref.dtype)   # (1, Bt, Op)


# -------------------------------- wrapper ------------------------------------
def _round_up(v, m):
    return (v + m - 1) // m * m


def _pad_to(arr, shape):
    pads = [(0, s - d) for d, s in zip(arr.shape, shape)]
    return jnp.pad(arr, pads)


def _choose_batch_tile(batch, n_pad, f_pad, h_pad, n_step, o_pad,
                       vmem_budget_bytes=32 * 1024 * 1024):
    """Largest batch tile whose double-buffered inputs + f32 working set fit
    a conservative VMEM budget (safe on v5e/v6e/v7x default scoped limits)."""
    weight_bytes = 2 * (f_pad * h_pad + n_step * h_pad * h_pad
                        + h_pad * h_pad + h_pad * o_pad) + 4 * (2 * h_pad + o_pad)
    per_graph_in = 2 * (n_pad * f_pad + n_pad * n_pad) + 4 * n_pad  # bf16 x,A + f32 mask
    per_graph_work = 5 * n_pad * h_pad * 4                          # h/hp/msg/node (f32)
    per_graph = 2 * per_graph_in + per_graph_work                   # 2x = double buffer
    avail = max(vmem_budget_bytes - 2 * weight_bytes, per_graph)
    return int(max(1, min(batch, avail // per_graph)))


def ggin_forward(data1, data2, params, n_prop_step, batch_tile=None):
    """Fused forward for both graphs in a single pallas_call."""
    x1, A1, m1 = data1
    x2, A2, m2 = data2
    B1, N1, fin = x1.shape
    B2, N2, _ = x2.shape
    hid = params['w_atom'].shape[1]
    out_dim = params['w_lbl'].shape[1]
    n_step = params['w_mp'].shape[0]

    # Lane-dense padding (exact: padded features/weights/masks are zero).
    Np = _round_up(max(N1, N2), LANE)
    Fp = _round_up(fin, LANE)
    Hp = _round_up(hid, LANE)
    Op = _round_up(out_dim, LANE)

    def prep(x, A, m):
        b = x.shape[0]
        xp = _pad_to(x.astype(jnp.float32), (b, Np, Fp)).astype(jnp.bfloat16)
        ap = _pad_to(A.astype(jnp.float32), (b, Np, Np)).astype(jnp.bfloat16)
        mp = _pad_to(m.astype(jnp.float32), (b, Np))[..., None]
        return xp, ap, mp

    x1p, A1p, m1p = prep(x1, A1, m1)
    x2p, A2p, m2p = prep(x2, A2, m2)
    x_all = jnp.concatenate([x1p, x2p], axis=0)
    A_all = jnp.concatenate([A1p, A2p], axis=0)
    m_all = jnp.concatenate([m1p, m2p], axis=0)
    b_tot = B1 + B2

    if batch_tile is None:
        bt = _choose_batch_tile(b_tot, Np, Fp, Hp, n_step, Op)
    else:
        bt = max(1, min(batch_tile, b_tot))
    grid_b = pl.cdiv(b_tot, bt)
    b_pad = grid_b * bt
    x_all = _pad_to(x_all, (b_pad, Np, Fp))
    A_all = _pad_to(A_all, (b_pad, Np, Np))
    m_all = _pad_to(m_all, (b_pad, Np, 1))

    # Weights: bf16 for MXU operands, biases stay f32.
    w_atom = _pad_to(params['w_atom'], (Fp, Hp)).astype(jnp.bfloat16)
    b_atom = _pad_to(params['b_atom'], (1, Hp)).astype(jnp.float32)
    w_mp = _pad_to(params['w_mp'], (n_step, Hp, Hp)).astype(jnp.bfloat16)
    w_pre = _pad_to(params['w_pre'], (Hp, Hp)).astype(jnp.bfloat16)
    b_pre = _pad_to(params['b_pre'], (1, Hp)).astype(jnp.float32)
    w_lbl = _pad_to(params['w_lbl'], (Hp, Op)).astype(jnp.bfloat16)
    b_lbl = _pad_to(params['b_lbl'], (1, Op)).astype(jnp.float32)

    kernel = functools.partial(_ggin_kernel, n_prop_step=n_prop_step)
    const2 = lambda b: (0, 0)
    const3 = lambda b: (0, 0, 0)

    out = pl.pallas_call(
        kernel,
        out_shape=jax.ShapeDtypeStruct((grid_b, bt, Op), jnp.float32),
        grid=(grid_b,),
        in_specs=[
            pl.BlockSpec((bt, Np, Fp), lambda b: (b, 0, 0)),   # x
            pl.BlockSpec((bt, Np, Np), lambda b: (b, 0, 0)),   # A
            pl.BlockSpec((bt, Np, 1), lambda b: (b, 0, 0)),    # mask
            pl.BlockSpec((Fp, Hp), const2),                    # w_atom (resident)
            pl.BlockSpec((1, Hp), const2),                     # b_atom
            pl.BlockSpec((n_step, Hp, Hp), const3),            # w_mp
            pl.BlockSpec((Hp, Hp), const2),                    # w_pre
            pl.BlockSpec((1, Hp), const2),                     # b_pre
            pl.BlockSpec((Hp, Op), const2),                    # w_lbl
            pl.BlockSpec((1, Op), const2),                     # b_lbl
        ],
        out_specs=pl.BlockSpec((1, bt, Op), lambda b: (b, 0, 0)),
        compiler_params=pltpu.CompilerParams(
            dimension_semantics=("parallel",),
            vmem_limit_bytes=48 * 1024 * 1024),
    )(x_all, A_all, m_all,
      w_atom, b_atom, w_mp, w_pre, b_pre, w_lbl, b_lbl)

    pred_all = out.reshape(b_pad, Op)[:b_tot, :out_dim]
    return pred_all[:B1], pred_all[B1:b_tot]


# ------------------- pure-JAX references (correctness) -----------------------
def _ref_single_f32(x, A, mask, p, n_prop_step):
    """Bit-faithful f32 reference of the PyTorch forward."""
    h = jnp.einsum('bnf,fh->bnh', x, p['w_atom']) + p['b_atom'][None]
    N = x.shape[1]
    A_hat = A + jnp.eye(N, dtype=jnp.float32)[None]
    m3 = mask[:, :, None]
    for s in range(n_prop_step):
        msg = jnp.einsum('bnm,bmk->bnk', A_hat,
                         jnp.einsum('bnh,hk->bnk', h, p['w_mp'][s]))
        h = h + msg * m3
    node = jnp.einsum('bnh,hk->bnk', h, p['w_pre']) + p['b_pre'][None]
    node = jnp.where(node >= 0, node, NEG_SLOPE * node) * m3
    g = jnp.sum(node, axis=1) / jnp.sum(mask, axis=1, keepdims=True)
    return g @ p['w_lbl'] + p['b_lbl']


def _ref_single_bf16(x, A, mask, p, n_prop_step):
    """Reference emulating the kernel's bf16-operand / f32-accumulate math."""
    bf = lambda t: t.astype(jnp.bfloat16)
    f32 = jnp.float32
    h = jnp.einsum('bnf,fh->bnh', bf(x), bf(p['w_atom']),
                   preferred_element_type=f32) + p['b_atom'][None]
    m3 = mask[:, :, None]
    for s in range(n_prop_step):
        hp = jnp.einsum('bnh,hk->bnk', bf(h), bf(p['w_mp'][s]),
                        preferred_element_type=f32)
        msg = jnp.einsum('bnm,bmk->bnk', bf(A), bf(hp),
                         preferred_element_type=f32) + hp
        h = h + msg * m3
    node = jnp.einsum('bnh,hk->bnk', bf(h), bf(p['w_pre']),
                      preferred_element_type=f32) + p['b_pre'][None]
    node = jnp.where(node >= 0, node, NEG_SLOPE * node) * m3
    g = jnp.sum(node, axis=1) / jnp.maximum(
        jnp.sum(mask, axis=1, keepdims=True), 1.0)
    return jnp.einsum('bh,ho->bo', bf(g), bf(p['w_lbl']),
                      preferred_element_type=f32) + p['b_lbl']


# ---------------- parameter construction (deterministic) ---------------------
def init_params(key, in_features, hidden_dim, out_features, n_prop_step):
    ks = jax.random.split(key, 6)
    scale = lambda fan_in: 1.0 / jnp.sqrt(jnp.float32(fan_in))
    return {
        'w_atom': jax.random.normal(ks[0], (in_features, hidden_dim), jnp.float32) * scale(in_features),
        'b_atom': jax.random.normal(ks[1], (1, hidden_dim), jnp.float32) * 0.01,
        'w_mp':   jax.random.normal(ks[2], (n_prop_step, hidden_dim, hidden_dim), jnp.float32) * scale(hidden_dim),
        'w_pre':  jax.random.normal(ks[3], (hidden_dim, hidden_dim), jnp.float32) * scale(hidden_dim),
        'b_pre':  jax.random.normal(ks[4], (1, hidden_dim), jnp.float32) * 0.01,
        'w_lbl':  jax.random.normal(ks[5], (hidden_dim, out_features), jnp.float32) * scale(hidden_dim),
        'b_lbl':  jnp.zeros((1, out_features), jnp.float32),
    }


if __name__ == "__main__":
    B, N1, N2 = 2, 8, 12
    in_features, hidden_dim, out_features = 16, 32, 4
    n_prop_step = 2

    key = jax.random.PRNGKey(0)
    k_p, k1, k2, ka1, ka2 = jax.random.split(key, 5)
    params = init_params(k_p, in_features, hidden_dim, out_features, n_prop_step)

    x1 = jax.random.normal(k1, (B, N1, in_features), jnp.float32)
    x2 = jax.random.normal(k2, (B, N2, in_features), jnp.float32)
    A1 = (jax.random.uniform(ka1, (B, N1, N1)) > 0.5).astype(jnp.float32)
    A2 = (jax.random.uniform(ka2, (B, N2, N2)) > 0.5).astype(jnp.float32)
    # masks: first k nodes valid per graph (deterministic, non-zero sums)
    m1 = (jnp.arange(N1)[None, :] < jnp.array([[8], [5]])).astype(jnp.float32)
    m2 = (jnp.arange(N2)[None, :] < jnp.array([[12], [7]])).astype(jnp.float32)

    # batch_tile=2 -> grid of 2 steps over the 4 fused graphs (exercises the
    # double-buffered pipeline even at toy sizes).
    pred1, pred2 = ggin_forward((x1, A1, m1), (x2, A2, m2), params,
                                n_prop_step, batch_tile=2)
    jax.block_until_ready((pred1, pred2))

    ref1 = _ref_single_bf16(x1, A1, m1, params, n_prop_step)
    ref2 = _ref_single_bf16(x2, A2, m2, params, n_prop_step)
    ref1_f32 = _ref_single_f32(x1, A1, m1, params, n_prop_step)  # semantics doc
    ref2_f32 = _ref_single_f32(x2, A2, m2, params, n_prop_step)

    assert pred1.shape == (B, out_features) and pred2.shape == (B, out_features)
    assert bool(jnp.all(jnp.isfinite(pred1))) and bool(jnp.all(jnp.isfinite(pred2)))
    assert jnp.allclose(pred1, ref1, atol=5e-2, rtol=5e-2)
    assert jnp.allclose(pred2, ref2, atol=5e-2, rtol=5e-2)
    assert ref1_f32.shape == pred1.shape and ref2_f32.shape == pred2.shape

    print("KERNEL_OK")
</pallas_src>

<mosaic_0001>
module attributes {stable_mosaic.version = 11 : i64} {
  func.func @_ggin_kernel(%arg0: i32, %arg1: memref<2x128x128xbf16, #tpu.memory_space<vmem>>, %arg2: memref<2x128x128xbf16, #tpu.memory_space<vmem>>, %arg3: memref<2x128x1xf32, #tpu.memory_space<vmem>>, %arg4: memref<128x128xbf16, #tpu.memory_space<vmem>>, %arg5: memref<1x128xf32, #tpu.memory_space<vmem>>, %arg6: memref<2x128x128xbf16, #tpu.memory_space<vmem>>, %arg7: memref<128x128xbf16, #tpu.memory_space<vmem>>, %arg8: memref<1x128xf32, #tpu.memory_space<vmem>>, %arg9: memref<128x128xbf16, #tpu.memory_space<vmem>>, %arg10: memref<1x128xf32, #tpu.memory_space<vmem>>, %arg11: memref<1x2x128xf32, #tpu.memory_space<vmem>>) attributes {dimension_semantics = [#tpu.dimension_semantics<parallel>], iteration_bounds = array<i64: 2>, scalar_prefetch = 0 : i64, scratch_operands = 0 : i64, tpu.core_type = #tpu.core_type<tc>, window_params = [{transform_indices = @transform_0, window_bounds = array<i64: 2, 128, 128>}, {transform_indices = @transform_1, window_bounds = array<i64: 2, 128, 128>}, {transform_indices = @transform_2, window_bounds = array<i64: 2, 128, 1>}, {pipeline_mode = #tpu.pipeline_mode<synchronous>, transform_indices = @transform_3, window_bounds = array<i64: 128, 128>}, {pipeline_mode = #tpu.pipeline_mode<synchronous>, transform_indices = @transform_4, window_bounds = array<i64: 1, 128>}, {pipeline_mode = #tpu.pipeline_mode<synchronous>, transform_indices = @transform_5, window_bounds = array<i64: 2, 128, 128>}, {pipeline_mode = #tpu.pipeline_mode<synchronous>, transform_indices = @transform_6, window_bounds = array<i64: 128, 128>}, {pipeline_mode = #tpu.pipeline_mode<synchronous>, transform_indices = @transform_7, window_bounds = array<i64: 1, 128>}, {pipeline_mode = #tpu.pipeline_mode<synchronous>, transform_indices = @transform_8, window_bounds = array<i64: 128, 128>}, {pipeline_mode = #tpu.pipeline_mode<synchronous>, transform_indices = @transform_9, window_bounds = array<i64: 1, 128>}, {transform_indices = @transform_10, window_bounds = array<i64: 1, 2, 128>}]} {
    %c0 = arith.constant 0 : index
    %c0_0 = arith.constant 0 : index
    %c0_1 = arith.constant 0 : index
    %0 = vector.load %arg1[%c0, %c0_0, %c0_1] : memref<2x128x128xbf16, #tpu.memory_space<vmem>>, vector<2x128x128xbf16>
    %c0_2 = arith.constant 0 : index
    %c0_3 = arith.constant 0 : index
    %c0_4 = arith.constant 0 : index
    %1 = vector.load %arg2[%c0_2, %c0_3, %c0_4] : memref<2x128x128xbf16, #tpu.memory_space<vmem>>, vector<2x128x128xbf16>
    %c0_5 = arith.constant 0 : index
    %c0_6 = arith.constant 0 : index
    %c0_7 = arith.constant 0 : index
    %2 = vector.load %arg3[%c0_5, %c0_6, %c0_7] : memref<2x128x1xf32, #tpu.memory_space<vmem>>, vector<2x128x1xf32>
    %3 = vector.shape_cast %0 : vector<2x128x128xbf16> to vector<256x128xbf16>
    %c0_8 = arith.constant 0 : index
    %c0_9 = arith.constant 0 : index
    %4 = vector.load %arg4[%c0_8, %c0_9] : memref<128x128xbf16, #tpu.memory_space<vmem>>, vector<128x128xbf16>
    %cst = arith.constant dense<0.000000e+00> : vector<256x128xf32>
    %5 = tpu.matmul %3, %4, %cst {dimension_numbers = #tpu.dot_dimension_numbers<[1], [0], [0], [1], [0, 0, 1, 1], [], []>} : vector<256x128xbf16>, vector<128x128xbf16>, vector<256x128xf32> -> vector<256x128xf32>
    %c0_10 = arith.constant 0 : index
    %c0_11 = arith.constant 0 : index
    %6 = vector.load %arg5[%c0_10, %c0_11] : memref<1x128xf32, #tpu.memory_space<vmem>>, vector<1x128xf32>
    %7 = vector.broadcast %6 : vector<1x128xf32> to vector<256x128xf32>
    %8 = arith.addf %5, %7 : vector<256x128xf32>
    %9 = vector.shape_cast %8 : vector<256x128xf32> to vector<2x128x128xf32>
    %10 = vector.shape_cast %9 : vector<2x128x128xf32> to vector<256x128xf32>
    %11 = arith.truncf %10 : vector<256x128xf32> to vector<256x128xbf16>
    %c0_12 = arith.constant 0 : index
    %c0_13 = arith.constant 0 : index
    %c0_14 = arith.constant 0 : index
    %12 = vector.load %arg6[%c0_12, %c0_13, %c0_14] : memref<2x128x128xbf16, #tpu.memory_space<vmem>>, vector<1x128x128xbf16>
    %13 = vector.shape_cast %12 : vector<1x128x128xbf16> to vector<128x128xbf16>
    %cst_15 = arith.constant dense<0.000000e+00> : vector<256x128xf32>
    %14 = tpu.matmul %11, %13, %cst_15 {dimension_numbers = #tpu.dot_dimension_numbers<[1], [0], [0], [1], [0, 0, 1, 1], [], []>} : vector<256x128xbf16>, vector<128x128xbf16>, vector<256x128xf32> -> vector<256x128xf32>
    %15 = vector.shape_cast %14 : vector<256x128xf32> to vector<2x128x128xf32>
    %16 = arith.truncf %15 : vector<2x128x128xf32> to vector<2x128x128xbf16>
    "tpu.trace_start"() <{level = 10 : i32, message = "bnm,bmk->bnk"}> : () -> ()
    %cst_16 = arith.constant dense<0.000000e+00> : vector<2x128x128xf32>
    %17 = tpu.matmul %1, %16, %cst_16 {dimension_numbers = #tpu.dot_dimension_numbers<[2], [1], [1], [2], [0, 0, 0, 1, 1, 2], [0], [0]>} : vector<2x128x128xbf16>, vector<2x128x128xbf16>, vector<2x128x128xf32> -> vector<2x128x128xf32>
    "tpu.trace_stop"() : () -> ()
    %18 = arith.addf %17, %15 : vector<2x128x128xf32>
    %19 = vector.broadcast %2 : vector<2x128x1xf32> to vector<2x128x128xf32>
    %20 = arith.mulf %18, %19 : vector<2x128x128xf32>
    %21 = arith.addf %9, %20 : vector<2x128x128xf32>
    %22 = vector.shape_cast %21 : vector<2x128x128xf32> to vector<256x128xf32>
    %23 = arith.truncf %22 : vector<256x128xf32> to vector<256x128xbf16>
    %c1 = arith.constant 1 : index
    %c0_17 = arith.constant 0 : index
    %c0_18 = arith.constant 0 : index
    %24 = vector.load %arg6[%c1, %c0_17, %c0_18] : memref<2x128x128xbf16, #tpu.memory_space<vmem>>, vector<1x128x128xbf16>
    %25 = vector.shape_cast %24 : vector<1x128x128xbf16> to vector<128x128xbf16>
    %cst_19 = arith.constant dense<0.000000e+00> : vector<256x128xf32>
    %26 = tpu.matmul %23, %25, %cst_19 {dimension_numbers = #tpu.dot_dimension_numbers<[1], [0], [0], [1], [0, 0, 1, 1], [], []>} : vector<256x128xbf16>, vector<128x128xbf16>, vector<256x128xf32> -> vector<256x128xf32>
    %27 = vector.shape_cast %26 : vector<256x128xf32> to vector<2x128x128xf32>
    %28 = arith.truncf %27 : vector<2x128x128xf32> to vector<2x128x128xbf16>
    "tpu.trace_start"() <{level = 10 : i32, message = "bnm,bmk->bnk"}> : () -> ()
    %cst_20 = arith.constant dense<0.000000e+00> : vector<2x128x128xf32>
    %29 = tpu.matmul %1, %28, %cst_20 {dimension_numbers = #tpu.dot_dimension_numbers<[2], [1], [1], [2], [0, 0, 0, 1, 1, 2], [0], [0]>} : vector<2x128x128xbf16>, vector<2x128x128xbf16>, vector<2x128x128xf32> -> vector<2x128x128xf32>
    "tpu.trace_stop"() : () -> ()
    %30 = arith.addf %29, %27 : vector<2x128x128xf32>
    %31 = vector.broadcast %2 : vector<2x128x1xf32> to vector<2x128x128xf32>
    %32 = arith.mulf %30, %31 : vector<2x128x128xf32>
    %33 = arith.addf %21, %32 : vector<2x128x128xf32>
    %34 = vector.shape_cast %33 : vector<2x128x128xf32> to vector<256x128xf32>
    %35 = arith.truncf %34 : vector<256x128xf32> to vector<256x128xbf16>
    %c0_21 = arith.constant 0 : index
    %c0_22 = arith.constant 0 : index
    %36 = vector.load %arg7[%c0_21, %c0_22] : memref<128x128xbf16, #tpu.memory_space<vmem>>, vector<128x128xbf16>
    %cst_23 = arith.constant dense<0.000000e+00> : vector<256x128xf32>
    %37 = tpu.matmul %35, %36, %cst_23 {dimension_numbers = #tpu.dot_dimension_numbers<[1], [0], [0], [1], [0, 0, 1, 1], [], []>} : vector<256x128xbf16>, vector<128x128xbf16>, vector<256x128xf32> -> vector<256x128xf32>
    %c0_24 = arith.constant 0 : index
    %c0_25 = arith.constant 0 : index
    %38 = vector.load %arg8[%c0_24, %c0_25] : memref<1x128xf32, #tpu.memory_space<vmem>>, vector<1x128xf32>
    %39 = vector.broadcast %38 : vector<1x128xf32> to vector<256x128xf32>
    %40 = arith.addf %37, %39 : vector<256x128xf32>
    %cst_26 = arith.constant 0.000000e+00 : f32
    %41 = vector.broadcast %cst_26 : f32 to vector<256x128xf32>
    %42 = arith.cmpf oge, %40, %41 : vector<256x128xf32>
    %cst_27 = arith.constant 0.00999999977 : f32
    %43 = vector.broadcast %cst_27 : f32 to vector<256x128xf32>
    %44 = arith.mulf %43, %40 : vector<256x128xf32>
    %45 = arith.select %42, %40, %44 : vector<256x128xi1>, vector<256x128xf32>
    %46 = vector.shape_cast %45 : vector<256x128xf32> to vector<2x128x128xf32>
    %47 = vector.broadcast %2 : vector<2x128x1xf32> to vector<2x128x128xf32>
    %48 = arith.mulf %46, %47 : vector<2x128x128xf32>
    %cst_28 = arith.constant dense<0.000000e+00> : vector<2x128xf32>
    %49 = vector.multi_reduction <add>, %48, %cst_28 [1] : vector<2x128x128xf32> to vector<2x128xf32>
    %cst_29 = arith.constant dense<0.000000e+00> : vector<2x1xf32>
    %50 = vector.multi_reduction <add>, %2, %cst_29 [1] : vector<2x128x1xf32> to vector<2x1xf32>
    %cst_30 = arith.constant 1.000000e+00 : f32
    %51 = vector.broadcast %cst_30 : f32 to vector<2x1xf32>
    %52 = arith.maximumf %50, %51 : vector<2x1xf32>
    %53 = tpu.reciprocal %52 {approx = true} : vector<2x1xf32> -> vector<2x1xf32>
    %54 = vector.broadcast %53 : vector<2x1xf32> to vector<2x128xf32>
    %55 = arith.mulf %49, %54 : vector<2x128xf32>
    %56 = arith.truncf %55 : vector<2x128xf32> to vector<2x128xbf16>
    %c0_31 = arith.constant 0 : index
    %c0_32 = arith.constant 0 : index
    %57 = vector.load %arg9[%c0_31, %c0_32] : memref<128x128xbf16, #tpu.memory_space<vmem>>, vector<128x128xbf16>
    %cst_33 = arith.constant dense<0.000000e+00> : vector<2x128xf32>
    %58 = tpu.matmul %56, %57, %cst_33 {dimension_numbers = #tpu.dot_dimension_numbers<[1], [0], [0], [1], [0, 0, 1, 1], [], []>} : vector<2x128xbf16>, vector<128x128xbf16>, vector<2x128xf32> -> vector<2x128xf32>
    %c0_34 = arith.constant 0 : index
    %c0_35 = arith.constant 0 : index
    %59 = vector.load %arg10[%c0_34, %c0_35] : memref<1x128xf32, #tpu.memory_space<vmem>>, vector<1x128xf32>
    %60 = vector.broadcast %59 : vector<1x128xf32> to vector<2x128xf32>
    %61 = arith.addf %58, %60 : vector<2x128xf32>
    %62 = vector.shape_cast %61 : vector<2x128xf32> to vector<1x2x128xf32>
    %c0_36 = arith.constant 0 : index
    %c0_37 = arith.constant 0 : index
    %c0_38 = arith.constant 0 : index
    %63 = vector.load %arg11[%c0_36, %c0_37, %c0_38] : memref<1x2x128xf32, #tpu.memory_space<vmem>>, vector<1x2x128xf32>
    tpu.vector_store %arg11[%c0_36, %c0_37, %c0_38], %62 {strides = array<i32>} : memref<1x2x128xf32, #tpu.memory_space<vmem>>, vector<1x2x128xf32>,
    return
  }
  func.func @transform_0(%arg0: i32) -> (i32, i32, i32) {
    %c0_i32 = arith.constant 0 : i32
    %c0_i32_0 = arith.constant 0 : i32
    %c0_i32_1 = arith.constant 0 : i32
    return %arg0, %c0_i32, %c0_i32_0 : i32, i32, i32
  }
  func.func @transform_1(%arg0: i32) -> (i32, i32, i32) {
    %c0_i32 = arith.constant 0 : i32
    %c0_i32_0 = arith.constant 0 : i32
    %c0_i32_1 = arith.constant 0 : i32
    return %arg0, %c0_i32, %c0_i32_0 : i32, i32, i32
  }
  func.func @transform_2(%arg0: i32) -> (i32, i32, i32) {
    %c0_i32 = arith.constant 0 : i32
    %c0_i32_0 = arith.constant 0 : i32
    %c0_i32_1 = arith.constant 0 : i32
    return %arg0, %c0_i32, %c0_i32_0 : i32, i32, i32
  }
  func.func @transform_3(%arg0: i32) -> (i32, i32) {
    %c0_i32 = arith.constant 0 : i32
    %c0_i32_0 = arith.constant 0 : i32
    %c0_i32_1 = arith.constant 0 : i32
    return %c0_i32, %c0_i32_0 : i32, i32
  }
  func.func @transform_4(%arg0: i32) -> (i32, i32) {
    %c0_i32 = arith.constant 0 : i32
    %c0_i32_0 = arith.constant 0 : i32
    %c0_i32_1 = arith.constant 0 : i32
    return %c0_i32, %c0_i32_0 : i32, i32
  }
  func.func @transform_5(%arg0: i32) -> (i32, i32, i32) {
    %c0_i32 = arith.constant 0 : i32
    %c0_i32_0 = arith.constant 0 : i32
    %c0_i32_1 = arith.constant 0 : i32
    %c0_i32_2 = arith.constant 0 : i32
    return %c0_i32, %c0_i32_0, %c0_i32_1 : i32, i32, i32
  }
  func.func @transform_6(%arg0: i32) -> (i32, i32) {
    %c0_i32 = arith.constant 0 : i32
    %c0_i32_0 = arith.constant 0 : i32
    %c0_i32_1 = arith.constant 0 : i32
    return %c0_i32, %c0_i32_0 : i32, i32
  }
  func.func @transform_7(%arg0: i32) -> (i32, i32) {
    %c0_i32 = arith.constant 0 : i32
    %c0_i32_0 = arith.constant 0 : i32
    %c0_i32_1 = arith.constant 0 : i32
    return %c0_i32, %c0_i32_0 : i32, i32
  }
  func.func @transform_8(%arg0: i32) -> (i32, i32) {
    %c0_i32 = arith.constant 0 : i32
    %c0_i32_0 = arith.constant 0 : i32
    %c0_i32_1 = arith.constant 0 : i32
    return %c0_i32, %c0_i32_0 : i32, i32
  }
  func.func @transform_9(%arg0: i32) -> (i32, i32) {
    %c0_i32 = arith.constant 0 : i32
    %c0_i32_0 = arith.constant 0 : i32
    %c0_i32_1 = arith.constant 0 : i32
    return %c0_i32, %c0_i32_0 : i32, i32
  }
  func.func @transform_10(%arg0: i32) -> (i32, i32, i32) {
    %c0_i32 = arith.constant 0 : i32
    %c0_i32_0 = arith.constant 0 : i32
    %c0_i32_1 = arith.constant 0 : i32
    return %arg0, %c0_i32, %c0_i32_0 : i32, i32, i32
  }
}

</mosaic_0001>

<bundles_post_ra>
// kernel: tpu_custom_call.1
= control target key start
LH: loop header
LB: loop body
LE: loop exit
PB: predicated region body
PF: predicated region fallthrough
CT: control target
= control target key end

     0   :  { %s4625_s0 = inlined_call_operand.vmem [shape: bf16[4,128,128], index: 0, kind: input, shape index: {}]   ;;  %s4626_s1 = inlined_call_operand.vmem [shape: bf16[4,128,128], index: 1, kind: input, shape index: {}]   ;;  %s4627_s2 = inlined_call_operand.vmem [shape: f32[4,128,1], index: 2, kind: input, shape index: {}]   ;;  %s4628_s3 = inlined_call_operand.hbm [shape: bf16[128,128], index: 3, kind: input, shape index: {}]   ;;  %s4629_s4 = inlined_call_operand.vmem [shape: f32[1,128], index: 4, kind: input, shape index: {}]   ;;  %s4630_s5 = inlined_call_operand.hbm [shape: bf16[2,128,128], index: 5, kind: input, shape index: {}]   ;;  %s4631_s6 = inlined_call_operand.hbm [shape: bf16[128,128], index: 6, kind: input, shape index: {}]   ;;  %s4632_s7 = inlined_call_operand.vmem [shape: f32[1,128], index: 7, kind: input, shape index: {}]   ;;  %s4633_s8 = inlined_call_operand.hbm [shape: bf16[128,128], index: 8, kind: input, shape index: {}]   ;;  %s4634_s9 = inlined_call_operand.vmem [shape: f32[1,128], index: 9, kind: input, shape index: {}]   ;;  %s4635_s10 = inlined_call_operand.hbm [shape: f32[2,2,128], index: 10, kind: output, shape index: {}]  }
   0x1   :  { %4743 = sst [smem:[#allocation77_spill]] %s4628_s3 }
   0x2   :  { %4744 = sst [smem:[#allocation78_spill]] %s4630_s5 }
   0x3   :  { %15 = vsyncpa [#allocation3], 0 }
   0x4   :  { %16 = vsyncpa [#allocation6], 0 }
   0x5   :  { %17 = vsyncpa [#allocation9], 0 }
   0x6   :  { %18 = vsyncpa [#allocation4], 0 }
   0x7   :  { %20 = vsyncpa [#allocation4 + $0x1], 0  ;;  %s3418_s13 = smov 0   ;;  %s3420_s14 = smov 0  }
   0x8   :  { %s3422_s15 = smov 0   ;;  %s3424_s16 = smov 0  }
   0x9 LB: > { %4745 = sst [smem:[#allocation15_spill]] %s3350_s15  ;;  %s3439_s17 = sadd.s32 4294967295, %s3354_s16   ;;  %s3354_s16 = sphi %s3424_s16, %s4918_s16   ;;  %s3350_s15 = sphi %s3422_s15, %s4920_s15   ;;  %s3346_s14 = sphi %s3420_s14, %s4922_s14   ;;  %s3342_s13 = sphi %s3418_s13, %s4921_s13  }
   0xa   : > { %s2670_s18 = sadd.s32 4294967294, %s3354_s16   ;;  %s3443_s19 = sadd.s32 1, %s3354_s16  }
   0xb   : > { %4746 = sst [smem:[#allocation16_spill]] %s3443_s19  ;;  %s258_s20 = sadd.s32 1, %s3350_s15 }
   0xc   : > { %s255_s21 = ssub.s32 %s3354_s16, %s3443_s19  ;;  %p268_p0 = scmp.ne.s32.totalorder %s3350_s15, %s3346_s14 }
   0xd   : > { %p256_p1 = scmp.eq.s32.totalorder %s255_s21, 0  ;;  %p269_p2 = scmp.eq.s32.totalorder %s3439_s17, 1 }
   0xe   : > { %p274_p3 = scmp.ne.s32.totalorder %s3346_s14, %s3342_s13  ;;  %p275_p4 = scmp.eq.s32.totalorder %s2670_s18, 1 }
   0xf   : > { %s3454_s22 = scalar_select %p256_p1, %s3350_s15, %s258_s20  }
  0x10   : > { %p3456_p5 = por %p269_p2, %p268_p0  ;;  %p3460_p6 = por %p275_p4, %p274_p3 }
  0x11   : > { %4747 = sst [smem:[#allocation17_spill]] %s3454_s22  ;;  %p2671_p7 = scmp.ge.s32.totalorder %s3354_s16, 1 }
  0x12   : > { %s4749_s24 = scalar_select %p3460_p6, 1, 0 }
  0x13   : > { %p282_p8 = scmp.lt.s32.totalorder %s3354_s16, 3  ;;  %p3102_p9 = scmp.eq.s32.totalorder %s3439_s17, 0 }
  0x14   : > { %4750 = sst [smem:[#allocation18_spill]] %s4749_s24  ;;  %s3356_s18 = smov [#allocation5]  }
  0x15   : > { %p3467_p10 = pnand %p2671_p7, %p282_p8  ;;  %s4752_s5 = sld [smem:[#allocation78_spill]] }
  0x16   : > { %s4753_s3 = sld [smem:[#allocation77_spill]]  ;;  %s312_s20 = sshll.u32 %s3356_s18, 4  ;;  %s313_s20 = int_to_ptr.vmem [resolvable:$true] %s312_s20 }
  0x17   : > { %p3085_p11 = pneg %p3467_p10  ;;  %s3357_s21 = smov 64  }
  0x18   : > { %s3358_s26 = smov 4   ;;  %s3359_s27 = smov [#allocation2]  }
  0x19   : > { %p3481_p12 = pnand %p3102_p9, %p3085_p11  ;;  %s295_s29 = sshll.u32 %s3359_s27, 4  ;;  %s296_s29 = int_to_ptr.vmem [resolvable:$true] %s295_s29 }
  0x1a   : > { %s341_s15 = sshll.u32 %s4633_s8, 4  ;;  %s3360_s19 = smov [#allocation7]   ;;  %s342_s15 = int_to_ptr.hbm [resolvable:$true] %s341_s15 }
  0x1b   : > { %s310_s28 = sshll.u32 %s4752_s5, 4  ;;  %s324_s5 = sshll.u32 %s4631_s6, 4  ;;  %s311_s28 = int_to_ptr.hbm [resolvable:$true] %s310_s28  ;;  %s325_s5 = int_to_ptr.hbm [resolvable:$true] %s324_s5 }
  0x1c   : > { %s293_s11 = sshll.u32 %s4753_s3, 4  ;;  %s326_s24 = sshll.u32 %s3360_s19, 4  ;;  %s294_s11 = int_to_ptr.hbm [resolvable:$true] %s293_s11  ;;  %s327_s24 = int_to_ptr.vmem [resolvable:$true] %s326_s24 }
  0x1d   : > { %3091 = dma.hbm_to_vmem [thread:$0]  (!%p3481_p12), %s311_s28, 2048, %s313_s20, [#allocation6], %s3357_s21, %s3357_s21, %s3358_s26  }
  0x1e   : > { %3088 = dma.hbm_to_vmem [thread:$0]  (!%p3481_p12), %s294_s11, 1024, %s296_s29, [#allocation3], %s3357_s21, %s3357_s21, %s3358_s26  }
  0x1f   : > { %3094 = dma.hbm_to_vmem [thread:$0]  (!%p3481_p12), %s325_s5, 1024, %s327_s24, [#allocation6], %s3357_s21, %s3357_s21, %s3358_s26  }
  0x20   : > { %s3361_s28 = smov [#allocation8]   ;;  %392 = sbr.rel (%p3467_p10) target bundleno = 1624 (0x658), region = 60 }
  0x21   : > { %s343_s20 = sshll.u32 %s3361_s28, 4  ;;  %s344_s20 = int_to_ptr.vmem [resolvable:$true] %s343_s20 }
  0x22   : > { %3097 = dma.hbm_to_vmem [thread:$0]  (!%p3481_p12), %s342_s15, 1024, %s344_s20, [#allocation9], %s3357_s21, %s3357_s21, %s3358_s26  }
  0x25   : > { %3325 = dma.done.wait (%p3102_p9), [#allocation3], 1024  }
  0x26   : > { %3327 = vsyncadd (%p3102_p9), [#allocation3], 4294966272 }
  0x27   : > { %3329 = dma.done.wait (%p3102_p9), [#allocation6], 3072  }
  0x28   : > { %3331 = vsyncadd (%p3102_p9), [#allocation6], 4294964224 }
  0x29   : > { %3333 = dma.done.wait (%p3102_p9), [#allocation9], 1024  }
  0x2a   : > { %3335 = vsyncadd (%p3102_p9), [#allocation9], 4294966272  ;;  %v3026_v0 = vld [vmem:[#allocation2 + $0x38] sm:$0xff]  ;;  %v3025_v1 = vld [vmem:[#allocation2 + $0x30] sm:$0xff]  ;;  %s3514_s3 = sshll.u32 %s3439_s17, 1  ;;  %vm2347_vm0 = vcmask 7168  }
  0x2b   : > { %740 = vmatpush.bf16.msra.mxu0 %v3026_v0  ;;  %v3024_v2 = vld [vmem:[#allocation2 + $0x28] sm:$0xff]  ;;  %v3023_v3 = vld [vmem:[#allocation2 + $0x20] sm:$0xff]  ;;  %v3022_v4 = vld [vmem:[#allocation2 + $0x18] sm:$0xff]  ;;  %p460_p13 = scmp.lt.s32.totalorder %s3514_s3, 3  ;;  %s456_s20 = sand.u32 1, %s3346_s14  }
  0x2c   : > { %v3021_v5 = vld [vmem:[#allocation2 + $0x10] sm:$0xff]  ;;  %v3020_v6 = vld [vmem:[#allocation2 + $0x8] sm:$0xff]  ;;  %v3019_v7 = vld [vmem:[#allocation2] sm:$0xff]  ;;  %s2541_s17 = scalar_lea.hbm %s4635_s10, %s3514_s3  ;;  %s2531_s21 = scalar_lea.sflag [#allocation4], %s456_s20 }
  0x2d   : > { %s3518_s5 = scalar_select %p460_p13, %s3514_s3, 3  ;;  %v3034_v13 = vld [vmem:[#allocation5 + $0x38] sm:$0xff]  ;;  %v3033_v14 = vld [vmem:[#allocation5 + $0x30] sm:$0xff]  ;;  %v3032_v16 = vld [vmem:[#allocation5 + $0x28] sm:$0xff] }
  0x2e   : > { %909 = vmatpush.bf16.msra.mxu1 %v3034_v13  ;;  %3059 = vmatpush.bf16.msra.mxu3 %v3034_v13  ;;  %v3031_v17 = vld [vmem:[#allocation5 + $0x20] sm:$0xff]  ;;  %v3030_v18 = vld [vmem:[#allocation5 + $0x18] sm:$0xff]  ;;  %v3029_v20 = vld [vmem:[#allocation5 + $0x10] sm:$0xff]  ;;  %s2545_s12 = sshll.u32 %s2541_s17, 4  ;;  %s2546_s12 = int_to_ptr.hbm [resolvable:$true] %s2545_s12 }
  0x2f   : > { %741 = vmatpush.bf16.msra.mxu0 %v3025_v1  ;;  %s2984_s15 = sshll.u32 %s3518_s5, 6  ;;  %v3028_v21 = vld [vmem:[#allocation5 + $0x8] sm:$0xff]  ;;  %v3027_v22 = vld [vmem:[#allocation5] sm:$0xff]  ;;  %s2986_s11 = sshll.u32 %s3518_s5, 7 }
  0x30   : > { %s3526_s22 = scalar_lea.vmem %s4625_s0, %s2984_s15  ;;  %v3540_v26 = vld [vmem:[%s4629_s4] ss:$0 sm:$0xff]  ;;  %s3663_s26 = scalar_lea.vmem %s4627_s2, %s2986_s11 }
  0x31   : > { %v2987_v8 = vld [vmem:[%s3526_s22] sm:$0xff]  ;;  %v2988_v9 = vld [vmem:[%s3526_s22 + $0x8] sm:$0xff]  ;;  %v2989_v10 = vld [vmem:[%s3526_s22 + $0x10] sm:$0xff]  ;;  %s3877_s30 = scalar_lea.vmem %s4626_s1, %s2984_s15  ;;  %s2682_s5 = sshll.u32 %s456_s20, 1 }
  0x32   : > { %v2990_v11 = vld [vmem:[%s3526_s22 + $0x18] sm:$0xff]  ;;  %v2991_v12 = vld [vmem:[%s3526_s22 + $0x20] sm:$0xff]  ;;  %910 = vmatpush.bf16.msra.mxu1 %v3033_v14  ;;  %3060 = vmatpush.bf16.msra.mxu3 %v3033_v14  ;;  %v2992_v15 = vld [vmem:[%s3526_s22 + $0x28] sm:$0xff]  ;;  %s458_s25 = scalar_lea.vmem [#allocation10], %s2682_s5 }
  0x33   : > { %742 = vmatpush.bf16.msra.mxu0 %v3024_v2  ;;  %v2993_v19 = vld [vmem:[%s3526_s22 + $0x30] sm:$0xff]  ;;  %v2994_v23 = vld [vmem:[%s3526_s22 + $0x38] sm:$0xff]  ;;  %v2995_v24 = vld [vmem:[%s3526_s22 + $0x40] sm:$0xff]  ;;  %s2543_s11 = sshll.u32 %s458_s25, 4  ;;  %s2544_s11 = int_to_ptr.vmem [resolvable:$true] %s2543_s11 }
  0x34   : > { %v2996_v31 = vld [vmem:[%s3526_s22 + $0x48] sm:$0xff]  ;;  %v2997_v37 = vld [vmem:[%s3526_s22 + $0x50] sm:$0xff]  ;;  %v2998_v43 = vld [vmem:[%s3526_s22 + $0x58] sm:$0xff] }
  0x35   : > { %v2999_v49 = vld [vmem:[%s3526_s22 + $0x60] sm:$0xff]  ;;  %v3000_v55 = vld [vmem:[%s3526_s22 + $0x68] sm:$0xff]  ;;  %v3001_v61 = vld [vmem:[%s3526_s22 + $0x70] sm:$0xff] }
  0x36   : > { %911 = vmatpush.bf16.msra.mxu1 %v3032_v16  ;;  %3061 = vmatpush.bf16.msra.mxu3 %v3032_v16 }
  0x37   : > { %743 = vmatpush.bf16.msra.mxu0 %v3023_v3  ;;  %v3002_v3 = vld [vmem:[%s3526_s22 + $0x78] sm:$0xff] }
  0x3a   : > { %912 = vmatpush.bf16.msra.mxu1 %v3031_v17  ;;  %3062 = vmatpush.bf16.msra.mxu3 %v3031_v17 }
  0x3b   : > { %744 = vmatpush.bf16.msra.mxu0 %v3022_v4 }
  0x3e   : > { %913 = vmatpush.bf16.msra.mxu1 %v3030_v18  ;;  %3063 = vmatpush.bf16.msra.mxu3 %v3030_v18 }
  0x3f   : > { %745 = vmatpush.bf16.msra.mxu0 %v3021_v5 }
  0x42   : > { %914 = vmatpush.bf16.msra.mxu1 %v3029_v20  ;;  %3064 = vmatpush.bf16.msra.mxu3 %v3029_v20 }
  0x43   : > { %746 = vmatpush.bf16.msra.mxu0 %v3020_v6 }
  0x46   : > { %915 = vmatpush.bf16.msra.mxu1 %v3028_v21  ;;  %3065 = vmatpush.bf16.msra.mxu3 %v3028_v21 }
  0x47   : > { %747 = vmatpush.bf16.msra.mxu0 %v3019_v7 }
  0x4a   : > { %748 = vmatmul.bf16.vlgmr.msra.gmra.mxu0 %v2987_v8  ;;  %916 = vmatpush.bf16.msra.mxu1 %v3027_v22 }
  0x4b   : > { %3066 = vmatpush.bf16.msra.mxu3 %v3027_v22 }
  0x5a   : > { %753 = vmatmul.bf16.gmra.mxu0 %v2988_v9 }
  0x6a   : > { %758 = vmatmul.bf16.gmra.mxu0 %v2989_v10 }
  0x7a   : > { %763 = vmatmul.bf16.gmra.mxu0 %v2990_v11 }
  0x8a   : > { %768 = vmatmul.bf16.gmra.mxu0 %v2991_v12 }
  0x9a   : > { %773 = vmatmul.bf16.gmra.mxu0 %v2992_v15 }
  0xaa   : > { %778 = vmatmul.bf16.gmra.mxu0 %v2993_v19 }
  0xba   : > { %783 = vmatmul.bf16.gmra.mxu0 %v2994_v23 }
  0xc7   : > { %v749_v25 = vpop.f32.mrf.mxu0 }
  0xc8   : > { %v3543_v28 = vadd.f32 %v3540_v26, %v749_v25 }
  0xca   : > { %788 = vmatmul.bf16.gmra.mxu0 %v2995_v24 }
  0xcf   : > { %v751_v27 = vpop.f32.mrf.mxu0 }
  0xd0   : > { %v3546_v29 = vadd.f32 %v3540_v26, %v751_v27 }
  0xd2   : > { %v829_v30 = vpack.c.bf16 %v3546_v29, %v3543_v28 }
  0xd4   : > { %917 = vmatmul.bf16.vlgmr.msra.gmra.mxu1 %v829_v30 }
  0xd7   : > { %v754_v32 = vpop.f32.mrf.mxu0 }
  0xd8   : > { %v3552_v34 = vadd.f32 %v3540_v26, %v754_v32 }
  0xda   : > { %793 = vmatmul.bf16.gmra.mxu0 %v2996_v31 }
  0xdf   : > { %v756_v33 = vpop.f32.mrf.mxu0 }
  0xe0   : > { %v3555_v35 = vadd.f32 %v3540_v26, %v756_v33 }
  0xe2   : > { %v830_v36 = vpack.c.bf16 %v3555_v35, %v3552_v34 }
  0xe4   : > { %922 = vmatmul.bf16.gmra.mxu1 %v830_v36 }
  0xe7   : > { %v759_v38 = vpop.f32.mrf.mxu0 }
  0xe8   : > { %v3561_v40 = vadd.f32 %v3540_v26, %v759_v38 }
  0xea   : > { %798 = vmatmul.bf16.gmra.mxu0 %v2997_v37 }
  0xef   : > { %v761_v39 = vpop.f32.mrf.mxu0 }
  0xf0   : > { %v3564_v41 = vadd.f32 %v3540_v26, %v761_v39 }
  0xf2   : > { %v831_v42 = vpack.c.bf16 %v3564_v41, %v3561_v40 }
  0xf4   : > { %927 = vmatmul.bf16.gmra.mxu1 %v831_v42 }
  0xf7   : > { %v764_v44 = vpop.f32.mrf.mxu0 }
  0xf8   : > { %v3570_v46 = vadd.f32 %v3540_v26, %v764_v44 }
  0xfa   : > { %803 = vmatmul.bf16.gmra.mxu0 %v2998_v43 }
  0xff   : > { %v766_v45 = vpop.f32.mrf.mxu0 }
 0x100   : > { %v3573_v47 = vadd.f32 %v3540_v26, %v766_v45  ;;  %v3362_v45 = vmov 0  }
 0x101   : > { %3150 = vset.pattern.permute.xlu0 %v3362_v45  ;;  %3151 = vset.pattern.permute.xlu1 %v3362_v45 }
 0x102   : > { %v832_v48 = vpack.c.bf16 %v3573_v47, %v3570_v46  ;;  %3152 = vset.pattern.permute.xlu2 %v3362_v45 }
 0x104   : > { %932 = vmatmul.bf16.gmra.mxu1 %v832_v48  ;;  %v544_v48 = vld [vmem:[%s3663_s26] sm:$0xff] }
 0x105   : > { %1322 = vperm.xlu0 %3150, %v544_v48  }
 0x107   : > { %v769_v50 = vpop.f32.mrf.mxu0 }
 0x108   : > { %v3579_v52 = vadd.f32 %v3540_v26, %v769_v50 }
 0x10a   : > { %808 = vmatmul.bf16.gmra.mxu0 %v2999_v49 }
 0x10f   : > { %v771_v51 = vpop.f32.mrf.mxu0 }
 0x110   : > { %v3582_v53 = vadd.f32 %v3540_v26, %v771_v51 }
 0x112   : > { %v833_v54 = vpack.c.bf16 %v3582_v53, %v3579_v52 }
 0x114   : > { %937 = vmatmul.bf16.gmra.mxu1 %v833_v54 }
 0x117   : > { %v774_v56 = vpop.f32.mrf.mxu0 }
 0x118   : > { %v3588_v58 = vadd.f32 %v3540_v26, %v774_v56 }
 0x11a   : > { %813 = vmatmul.bf16.gmra.mxu0 %v3000_v55  ;;  %v545_v55 = vld [vmem:[%s3663_s26 + $0x8] sm:$0xff] }
 0x11b   : > { %1327 = vperm.xlu0 %3150, %v545_v55  }
 0x11f   : > { %v776_v57 = vpop.f32.mrf.mxu0 }
 0x120   : > { %v3591_v59 = vadd.f32 %v3540_v26, %v776_v57  ;;  %v2348_v57 = vsel %vm2347_vm0, %v544_v48, 0.0 }
 0x122   : > { %v834_v60 = vpack.c.bf16 %v3591_v59, %v3588_v58 }
 0x124   : > { %942 = vmatmul.bf16.gmra.mxu1 %v834_v60 }
 0x127   : > { %v779_v62 = vpop.f32.mrf.mxu0 }
 0x128   : > { %v3597_v0 = vadd.f32 %v3540_v26, %v779_v62 }
 0x12a   : > { %818 = vmatmul.bf16.gmra.mxu0 %v3001_v61  ;;  %4755 = vst [vmem:[#allocation19_spill] sm:$0xff] %v3597_v0  ;;  %v2349_v61 = vsel %vm2347_vm0, %v545_v55, 0.0  ;;  %v562_v55 = vld [vmem:[%s3663_s26 + $0x90] sm:$0xff] }
 0x12f   : > { %v781_v63 = vpop.f32.mrf.mxu0 }
 0x130   : > { %v3600_v1 = vadd.f32 %v3540_v26, %v781_v63  ;;  %v2350_v63 = vadd.f32 %v2349_v61, %v2348_v57  ;;  %v2388_v61 = vsel %vm2347_vm0, %v562_v55, 0.0 }
 0x132   : > { %4756 = vst [vmem:[#allocation20_spill] sm:$0xff] %v3600_v1  ;;  %v835_v2 = vpack.c.bf16 %v3600_v1, %v3597_v0 }
 0x134   : > { %947 = vmatmul.bf16.gmra.mxu1 %v835_v2  ;;  %v3684_v2 = vld [vmem:[%s3663_s26 + $0x30] sm:$0xff] }
 0x135   : > { %1352 = vperm.xlu0 %3150, %v3684_v2  }
 0x137   : > { %v784_v4 = vpop.f32.mrf.mxu0 }
 0x138   : > { %v3606_v6 = vadd.f32 %v3540_v26, %v784_v4 }
 0x13a   : > { %823 = vmatmul.bf16.gmra.mxu0 %v3002_v3  ;;  %4757 = vst [vmem:[#allocation21_spill] sm:$0xff] %v3606_v6 }
 0x13f   : > { %v786_v5 = vpop.f32.mrf.mxu0 }
 0x140   : > { %v3609_v7 = vadd.f32 %v3540_v26, %v786_v5 }
 0x142   : > { %4758 = vst [vmem:[#allocation22_spill] sm:$0xff] %v3609_v7  ;;  %v836_v8 = vpack.c.bf16 %v3609_v7, %v3606_v6 }
 0x144   : > { %952 = vmatmul.bf16.gmra.mxu1 %v836_v8 }
 0x147   : > { %v789_v9 = vpop.f32.mrf.mxu0 }
 0x148   : > { %v3614_v11 = vadd.f32 %v3540_v26, %v789_v9  ;;  %v546_v9 = vld [vmem:[%s3663_s26 + $0x10] sm:$0xff] }
 0x149   : > { %1332 = vperm.xlu1 %3151, %v546_v9  }
 0x14a   : > { %4759 = vst [vmem:[#allocation23_spill] sm:$0xff] %v3614_v11 }
 0x14f   : > { %v791_v10 = vpop.f32.mrf.mxu0 }
 0x150   : > { %v3617_v12 = vadd.f32 %v3540_v26, %v791_v10  ;;  %v3697_v10 = vld [vmem:[%s3663_s26 + $0x48] sm:$0xff] }
 0x151   : > { %v3619_v13 = vpop.f32.mrf.mxu1  ;;  %1367 = vperm.xlu0 %3150, %v3697_v10  }
 0x152   : > { %4760 = vst [vmem:[#allocation24_spill] sm:$0xff] %v3617_v12  ;;  %v837_v14 = vpack.c.bf16 %v3617_v12, %v3614_v11 }
 0x154   : > { %957 = vmatmul.bf16.gmra.mxu1 %v837_v14 }
 0x157   : > { %v794_v15 = vpop.f32.mrf.mxu0 }
 0x158   : > { %v3626_v18 = vadd.f32 %v3540_v26, %v794_v15  ;;  %v2351_v15 = vsel %vm2347_vm0, %v546_v9, 0.0  ;;  %v3737_v9 = vld [vmem:[%s3663_s26 + $0x78] sm:$0xff] }
 0x159   : > { %v3623_v16 = vpop.f32.mrf.mxu1 }
 0x15a   : > { %4761 = vst [vmem:[#allocation25_spill] sm:$0xff] %v3626_v18 }
 0x15f   : > { %v796_v17 = vpop.f32.mrf.mxu0 }
 0x160   : > { %v3629_v19 = vadd.f32 %v3540_v26, %v796_v17  ;;  %v2352_v17 = vadd.f32 %v2351_v15, %v2350_v63 }
 0x161   : > { %v3631_v20 = vpop.f32.mrf.mxu1 }
 0x162   : > { %4762 = vst [vmem:[#allocation26_spill] sm:$0xff] %v3629_v19  ;;  %v838_v21 = vpack.c.bf16 %v3629_v19, %v3626_v18  ;;  %v3805_v19 = vld [vmem:[%s3663_s26 + $0xe8] sm:$0xff] }
 0x164   : > { %962 = vmatmul.bf16.vlgmr.msra.gmra.mxu3 %v838_v21 }
 0x167   : > { %v799_v22 = vpop.f32.mrf.mxu0 }
 0x168   : > { %v3638_v25 = vadd.f32 %v3540_v26, %v799_v22 }
 0x169   : > { %v3635_v23 = vpop.f32.mrf.mxu1 }
 0x16a   : > { %4763 = vst [vmem:[#allocation27_spill] sm:$0xff] %v3638_v25 }
 0x16f   : > { %v801_v24 = vpop.f32.mrf.mxu0 }
 0x170   : > { %v3641_v27 = vadd.f32 %v3540_v26, %v801_v24  ;;  %v547_v24 = vld [vmem:[%s3663_s26 + $0x18] sm:$0xff] }
 0x171   : > { %v3643_v30 = vpop.f32.mrf.mxu1  ;;  %1337 = vperm.xlu1 %3151, %v547_v24  }
 0x172   : > { %4764 = vst [vmem:[#allocation28_spill] sm:$0xff] %v3641_v27  ;;  %v839_v31 = vpack.c.bf16 %v3641_v27, %v3638_v25 }
 0x174   : > { %967 = vmatmul.bf16.gmra.mxu3 %v839_v31  ;;  %v3707_v31 = vld [vmem:[%s3663_s26 + $0x60] sm:$0xff] }
 0x175   : > { %1382 = vperm.xlu0 %3150, %v3707_v31  }
 0x177   : > { %v804_v32 = vpop.f32.mrf.mxu0 }
 0x178   : > { %v3650_v37 = vadd.f32 %v3540_v26, %v804_v32  ;;  %v2353_v32 = vsel %vm2347_vm0, %v547_v24, 0.0  ;;  %v3749_v24 = vld [vmem:[%s3663_s26 + $0xa0] sm:$0xff] }
 0x179   : > { %v3647_v33 = vpop.f32.mrf.mxu1 }
 0x17a   : > { %4765 = vst [vmem:[#allocation29_spill] sm:$0xff] %v3650_v37 }
 0x17d   : > { %1397 = vperm.xlu0 %3150, %v3737_v9  }
 0x17f   : > { %v806_v36 = vpop.f32.mrf.mxu0 }
 0x180   : > { %v3653_v38 = vadd.f32 %v3540_v26, %v806_v36  ;;  %v3711_v36 = vadd.f32 %v2353_v32, %v2352_v17 }
 0x181   : > { %v3655_v39 = vpop.f32.mrf.mxu1 }
 0x182   : > { %4766 = vst [vmem:[#allocation30_spill] sm:$0xff] %v3653_v38  ;;  %v840_v42 = vpack.c.bf16 %v3653_v38, %v3650_v37 }
 0x184   : > { %972 = vmatmul.bf16.gmra.mxu3 %v840_v42  ;;  %v3714_v42 = vld [vmem:[%s3663_s26 + $0x80] sm:$0xff] }
 0x185   : > { %v2385_v45 = vsel %vm2347_vm0, %v3714_v42, 0.0  ;;  %1412 = vperm.xlu0 %3150, %v562_v55  }
 0x187   : > { %v809_v43 = vpop.f32.mrf.mxu0 }
 0x188   : > { %v3669_v50 = vadd.f32 %v3540_v26, %v809_v43  ;;  %v3717_v43 = vld [vmem:[%s3663_s26 + $0x88] sm:$0xff] }
 0x189   : > { %v3665_v44 = vpop.f32.mrf.mxu1  ;;  %v2386_v48 = vsel %vm2347_vm0, %v3717_v43, 0.0 }
 0x18a   : > { %4767 = vst [vmem:[#allocation31_spill] sm:$0xff] %v3669_v50 }
 0x18f   : > { %v811_v49 = vpop.f32.mrf.mxu0 }
 0x190   : > { %v3672_v51 = vadd.f32 %v3540_v26, %v811_v49 }
 0x191   : > { %v3674_v54 = vpop.f32.mrf.mxu1 }
 0x192   : > { %4768 = vst [vmem:[#allocation32_spill] sm:$0xff] %v3672_v51  ;;  %v841_v56 = vpack.c.bf16 %v3672_v51, %v3669_v50  ;;  %v3774_v51 = vld [vmem:[%s3663_s26 + $0xc8] sm:$0xff] }
 0x193   : > { %v2402_v38 = vsel %vm2347_vm0, %v3774_v51, 0.0 }
 0x194   : > { %977 = vmatmul.bf16.gmra.mxu3 %v841_v56  ;;  %v2387_v56 = vadd.f32 %v2386_v48, %v2385_v45  ;;  %v2392_v45 = vsel %vm2347_vm0, %v3749_v24, 0.0  ;;  %v565_v48 = vld [vmem:[%s3663_s26 + $0xa8] sm:$0xff] }
 0x195   : > { %1427 = vperm.xlu0 %3150, %v565_v48  }
 0x196   : > { %v2389_v15 = vadd.f32 %v2388_v61, %v2387_v56  ;;  %v2394_v56 = vsel %vm2347_vm0, %v565_v48, 0.0 }
 0x197   : > { %v814_v60 = vpop.f32.mrf.mxu0 }
 0x198   : > { %v3688_v4 = vadd.f32 %v3540_v26, %v814_v60 }
 0x199   : > { %v3681_v62 = vpop.f32.mrf.mxu1 }
 0x19a   : > { %4769 = vst [vmem:[#allocation33_spill] sm:$0xff] %v3688_v4 }
 0x19f   : > { %v816_v3 = vpop.f32.mrf.mxu0 }
 0x1a0   : > { %v3691_v5 = vadd.f32 %v3540_v26, %v816_v3  ;;  %v3734_v3 = vld [vmem:[%s3663_s26 + $0x38] sm:$0xff] }
 0x1a1   : > { %v3693_v8 = vpop.f32.mrf.mxu1  ;;  %1357 = vperm.xlu1 %3151, %v3734_v3  }
 0x1a2   : > { %4770 = vst [vmem:[#allocation34_spill] sm:$0xff] %v3691_v5  ;;  %v842_v14 = vpack.c.bf16 %v3691_v5, %v3688_v4 }
 0x1a4   : > { %982 = vmatmul.bf16.gmra.mxu3 %v842_v14  ;;  %v3740_v14 = vld [vmem:[%s3663_s26 + $0x98] sm:$0xff] }
 0x1a7   : > { %v819_v21 = vpop.f32.mrf.mxu0 }
 0x1a8   : > { %v3725_v57 = vadd.f32 %v3540_v26, %v819_v21  ;;  %v2390_v21 = vsel %vm2347_vm0, %v3740_v14, 0.0 }
 0x1a9   : > { %v3703_v22 = vpop.f32.mrf.mxu1  ;;  %v2391_v32 = vadd.f32 %v2390_v21, %v2389_v15  ;;  %v3763_v15 = vld [vmem:[%s3663_s26 + $0x50] sm:$0xff] }
 0x1aa   : > { %4771 = vst [vmem:[#allocation35_spill] sm:$0xff] %v3725_v57  ;;  %1372 = vperm.xlu1 %3151, %v3763_v15   ;;  %v1009_v6 = vpack.c.bf16 %v3703_v22, %v3703_v22 }
 0x1af   : > { %v821_v49 = vpop.f32.mrf.mxu0 }
 0x1b0   : > { %v3728_v60 = vadd.f32 %v3540_v26, %v821_v49  ;;  %v2393_v49 = vadd.f32 %v2392_v45, %v2391_v32  ;;  %v568_v45 = vld [vmem:[%s3663_s26 + $0xc0] sm:$0xff] }
 0x1b1   : > { %v3731_v63 = vpop.f32.mrf.mxu1  ;;  %1442 = vperm.xlu0 %3150, %v568_v45  }
 0x1b2   : > { %4772 = vst [vmem:[#allocation36_spill] sm:$0xff] %v3728_v60  ;;  %v843_v17 = vpack.c.bf16 %v3728_v60, %v3725_v57  ;;  %v3756_v60 = vld [vmem:[%s3663_s26 + $0xb0] sm:$0xff]  ;;  %v2395_v57 = vadd.f32 %v2394_v56, %v2393_v49  ;;  %v2400_v56 = vsel %vm2347_vm0, %v568_v45, 0.0 }
 0x1b3   : > { %v2396_v5 = vsel %vm2347_vm0, %v3756_v60, 0.0 }
 0x1b4   : > { %987 = vmatmul.bf16.gmra.mxu3 %v843_v17  ;;  %v3766_v17 = vld [vmem:[%s3663_s26 + $0xb8] sm:$0xff]  ;;  %v2397_v21 = vadd.f32 %v2396_v5, %v2395_v57  ;;  %v3779_v57 = vld [vmem:[%s3663_s26 + $0xd0] sm:$0xff] }
 0x1b5   : > { %v2398_v32 = vsel %vm2347_vm0, %v3766_v17, 0.0 }
 0x1b6   : > { %v2399_v49 = vadd.f32 %v2398_v32, %v2397_v21  ;;  %v2404_v21 = vsel %vm2347_vm0, %v3779_v57, 0.0 }
 0x1b7   : > { %v824_v61 = vpop.f32.mrf.mxu0 }
 0x1b8   : > { %v2401_v50 = vadd.f32 %v2400_v56, %v2399_v49  ;;  %v3782_v55 = vadd.f32 %v3540_v26, %v824_v61  ;;  %v3792_v49 = vld [vmem:[%s3663_s26 + $0x68] sm:$0xff]  ;;  %v571_v56 = vld [vmem:[%s3663_s26 + $0xd8] sm:$0xff] }
 0x1b9   : > { %v3760_v4 = vpop.f32.mrf.mxu1  ;;  %1387 = vperm.xlu1 %3151, %v3792_v49   ;;  %1457 = vperm.xlu0 %3150, %v571_v56  }
 0x1ba   : > { %4773 = vst [vmem:[#allocation37_spill] sm:$0xff] %v3760_v4  ;;  %v2403_v37 = vadd.f32 %v2402_v38, %v2401_v50  ;;  %v3800_v50 = vld [vmem:[%s3663_s26 + $0xe0] sm:$0xff]  ;;  %v1011_v11 = vpack.c.bf16 %v3760_v4, %v3760_v4  ;;  %v549_v4 = vld [vmem:[%s3663_s26 + $0x28] sm:$0xff] }
 0x1bb   : > { %4774 = vst [vmem:[#allocation38_spill] sm:$0xff] %v3782_v55 }
 0x1bc   : > { %v2405_v25 = vadd.f32 %v2404_v21, %v2403_v37  ;;  %v2410_v21 = vsel %vm2347_vm0, %v3805_v19, 0.0 }
 0x1bf   : > { %v826_v5 = vpop.f32.mrf.mxu0 }
 0x1c0   : > { %v3785_v27 = vadd.f32 %v3540_v26, %v826_v5  ;;  %v2406_v26 = vsel %vm2347_vm0, %v571_v56, 0.0  ;;  %v2408_v5 = vsel %vm2347_vm0, %v3800_v50, 0.0  ;;  %v1003_v56 = vpack.c.bf16 %v3647_v33, %v3647_v33 }
 0x1c1   : > { %v3789_v32 = vpop.f32.mrf.mxu1  ;;  %v2407_v61 = vadd.f32 %v2406_v26, %v2405_v25  ;;  %v548_v25 = vld [vmem:[%s3663_s26 + $0x20] sm:$0xff]  ;;  %1402 = vperm.xlu1 %3151, %v3714_v42   ;;  %v1008_v42 = vpack.c.bf16 %v3693_v8, %v3693_v8 }
 0x1c2   : > { %4775 = vst [vmem:[#allocation39_spill] sm:$0xff] %v3785_v27  ;;  %v844_v38 = vpack.c.bf16 %v3785_v27, %v3782_v55  ;;  %v574_v27 = vld [vmem:[%s3663_s26 + $0xf0] sm:$0xff]  ;;  %v1012_v48 = vpack.c.bf16 %v3789_v32, %v3789_v32  ;;  %1342 = vperm.xlu2 %3152, %v548_v25  }
 0x1c3   : > { %4776 = vst [vmem:[#allocation40_spill] sm:$0xff] %v3789_v32  ;;  %v2409_v37 = vadd.f32 %v2408_v5, %v2407_v61  ;;  %v2412_v18 = vsel %vm2347_vm0, %v574_v27, 0.0  ;;  %1472 = vperm.xlu0 %3150, %v574_v27  }
 0x1c4   : > { %992 = vmatmul.bf16.gmra.mxu3 %v844_v38  ;;  %v3817_v38 = vld [vmem:[%s3663_s26 + $0xf8] sm:$0xff]  ;;  %v1108_v7 = vunpack.c.l.b16 %v1012_v48  ;;  %v1105_v48 = vunpack.c.l.b16 %v1009_v6 }
 0x1c5   : > { %v2411_v55 = vadd.f32 %v2410_v21, %v2409_v37  ;;  %v2414_v5 = vsel %vm2347_vm0, %v3817_v38, 0.0  ;;  %v1010_v21 = vpack.c.bf16 %v3731_v63, %v3731_v63 }
 0x1c7   : > { %v2413_v26 = vadd.f32 %v2412_v18, %v2411_v55  ;;  %v1106_v0 = vunpack.c.l.b16 %v1010_v21  ;;  %v1005_v21 = vpack.c.bf16 %v3665_v44, %v3665_v44 }
 0x1c9   : > { %v3813_v12 = vpop.f32.mrf.mxu1  ;;  %v2415_v37 = vadd.f32 %v2414_v5, %v2413_v26  ;;  %v1007_v26 = vpack.c.bf16 %v3681_v62, %v3681_v62  ;;  %1417 = vperm.xlu1 %3151, %v3740_v14   ;;  %v1004_v14 = vpack.c.bf16 %v3655_v39, %v3655_v39 }
 0x1ca   : > { %4777 = vst [vmem:[#allocation41_spill] sm:$0xff] %v3813_v12  ;;  %v1013_v61 = vpack.c.bf16 %v3813_v12, %v3813_v12  ;;  %v1107_v12 = vunpack.c.l.b16 %v1011_v11  ;;  %1347 = vperm.xlu2 %3152, %v549_v4   ;;  %v1006_v11 = vpack.c.bf16 %v3674_v54, %v3674_v54 }
 0x1cb   : > { %v2416_v55 = vrot.slane %v2415_v37, 4 }
 0x1cc   : > { %v1109_v18 = vunpack.c.l.b16 %v1013_v61  ;;  %v1116_v5 = vpack.c.b16 %v1107_v12, %v1106_v0  ;;  %v1104_v61 = vunpack.c.l.b16 %v1008_v42  ;;  %v1103_v0 = vunpack.c.l.b16 %v1007_v26 }
 0x1cd   : > { %v2417_v1 = vadd.f32 %v2416_v55, %v2415_v37  ;;  %v552_v55 = vld [vmem:[%s3663_s26 + $0x40] sm:$0xff]  ;;  %v2357_v26 = vsel %vm2347_vm0, %v549_v4, 0.0 }
 0x1ce   : > { %v1117_v32 = vpack.c.b16 %v1109_v18, %v1108_v7  ;;  %v1115_v18 = vpack.c.b16 %v1105_v48, %v1104_v61  ;;  %v1002_v48 = vpack.c.bf16 %v3643_v30, %v3643_v30  ;;  %v1001_v61 = vpack.c.bf16 %v3635_v23, %v3635_v23 }
 0x1cf   : > { %v2418_v45 = vrot.slane %v2417_v1, 2 }
 0x1d0   : > { %1126 = vmatpush.bf16.msra.mxu2 %v1117_v32  ;;  %v2355_v32 = vsel %vm2347_vm0, %v548_v25, 0.0  ;;  %v2359_v25 = vsel %vm2347_vm0, %v3684_v2, 0.0  ;;  %v1098_v27 = vunpack.c.l.b16 %v1002_v48 }
 0x1d1   : > { %v2419_v7 = vadd.f32 %v2418_v45, %v2417_v1  ;;  %v2356_v6 = vadd.f32 %v2355_v32, %v3711_v36  ;;  %v1102_v1 = vunpack.c.l.b16 %v1006_v11  ;;  %1432 = vperm.xlu1 %3151, %v3756_v60   ;;  %v2361_v11 = vsel %vm2347_vm0, %v3734_v3, 0.0 }
 0x1d2   : > { %1362 = vperm.xlu2 %3152, %v552_v55   ;;  %v1099_v32 = vunpack.c.l.b16 %v1003_v56  ;;  %v1000_v60 = vpack.c.bf16 %v3631_v20, %v3631_v20  ;;  %v999_v3 = vpack.c.bf16 %v3623_v16, %v3623_v16  ;;  %v998_v56 = vpack.c.bf16 %v3619_v13, %v3619_v13 }
 0x1d3   : > { %v2420_v37 = vrot.slane %v2419_v7, 1  ;;  %v1114_v45 = vpack.c.b16 %v1103_v0, %v1102_v1  ;;  %v2358_v36 = vadd.f32 %v2357_v26, %v2356_v6  ;;  %v2365_v0 = vsel %vm2347_vm0, %v3697_v10, 0.0  ;;  %v555_v6 = vld [vmem:[%s3663_s26 + $0x58] sm:$0xff] }
 0x1d4   : > { %1127 = vmatpush.bf16.msra.mxu2 %v1116_v5  ;;  %v1101_v5 = vunpack.c.l.b16 %v1005_v21  ;;  %v1094_v26 = vunpack.c.l.b16 %v998_v56  ;;  %v2369_v48 = vsel %vm2347_vm0, %v555_v6, 0.0 }
 0x1d5   : > { %v2421_v12 = vadd.f32 %v2420_v37, %v2419_v7  ;;  %v1100_v7 = vunpack.c.l.b16 %v1004_v14  ;;  %v2360_v2 = vadd.f32 %v2359_v25, %v2358_v36  ;;  %v2363_v37 = vsel %vm2347_vm0, %v552_v55, 0.0 }
 0x1d6   : > { %v1097_v14 = vunpack.c.l.b16 %v1001_v61  ;;  %v1096_v55 = vunpack.c.l.b16 %v1000_v60  ;;  %v1095_v25 = vunpack.c.l.b16 %v999_v3  ;;  %v2373_v61 = vsel %vm2347_vm0, %v3792_v49, 0.0 }
 0x1d7   : > { %v2423_v42 = vmax.f32 %v2421_v12, 1.0  ;;  %v1113_v4 = vpack.c.b16 %v1101_v5, %v1100_v7  ;;  %v2362_v21 = vadd.f32 %v2361_v11, %v2360_v2  ;;  %v1112_v12 = vpack.c.b16 %v1099_v32, %v1098_v27  ;;  %v3885_v11 = vld [vmem:[%s3877_s30] sm:$0xff] }
 0x1d8   : > { %1128 = vmatpush.bf16.msra.mxu2 %v1115_v18  ;;  %v1111_v10 = vpack.c.b16 %v1097_v14, %v1096_v55  ;;  %v1110_v36 = vpack.c.b16 %v1095_v25, %v1094_v26  ;;  %v3911_v14 = vld [vmem:[%s3877_s30 + $0x10] sm:$0xff]  ;;  %v3920_v55 = vld [vmem:[%s3877_s30 + $0x18] sm:$0xff] }
 0x1d9   : > { %3156 = vrcp.f32 %v2423_v42  ;;  %v2364_v1 = vadd.f32 %v2363_v37, %v2362_v21  ;;  %1447 = vperm.xlu1 %3151, %v3774_v51   ;;  %v558_v51 = vld [vmem:[%s3663_s26 + $0x70] sm:$0xff]  ;;  %s3294_s26 = sshra.s32 %s2546_s12, 4  ;;  %s3295_s26 = int_to_ptr.hbm [resolvable:$true] %s3294_s26 }
 0x1da   : > { %1377 = vperm.xlu2 %3152, %v555_v6   ;;  %v2375_v60 = vsel %vm2347_vm0, %v558_v51, 0.0  ;;  %s3296_s27 = scalar_lea.hbm %s3295_s26, 2  ;;  %p3301_p3 = scmp.lt.s32.totalorder %s3295_s26, %s4635_s10 }
 0x1db   : > { %v2366_v42 = vadd.f32 %v2365_v0, %v2364_v1  ;;  %v3901_v0 = vld [vmem:[%s3877_s30 + $0x8] sm:$0xff]  ;;  %p3297_p0 = scmp.ne.s32.totalorder %s3295_s26, %s3296_s27 }
 0x1dc   : > { %1129 = vmatpush.bf16.msra.mxu2 %v1114_v45  ;;  %v2367_v45 = vsel %vm2347_vm0, %v3763_v15, 0.0  ;;  %v2371_v15 = vsel %vm2347_vm0, %v3707_v31, 0.0 }
 0x1dd   : > { %v2368_v7 = vadd.f32 %v2367_v45, %v2366_v42  ;;  %v3936_v45 = vld [vmem:[%s3877_s30 + $0x28] sm:$0xff]  ;;  %p3298_p1 = pnand %p3297_p0, %p3456_p5 }
 0x1df   : > { %v3157_v18 = vpop.eup %3156  ;;  %v2370_v2 = vadd.f32 %v2369_v48, %v2368_v7  ;;  %v3040_v7 = vld [vmem:[#allocation5 + $0x68] sm:$0xff]  ;;  %p3299_p2 = pneg %p3298_p1 }
 0x1e0   : > { %1130 = vmatpush.bf16.msra.mxu2 %v1113_v4  ;;  %2433 = vperm.xlu0 %3150, %v3157_v18  }
 0x1e1   : > { %1462 = vperm.xlu1 %3151, %v3800_v50   ;;  %v2372_v4 = vadd.f32 %v2371_v15, %v2370_v2  ;;  %v2377_v50 = vsel %vm2347_vm0, %v3737_v9, 0.0  ;;  %v3944_v15 = vld [vmem:[%s3877_s30 + $0x30] sm:$0xff] }
 0x1e2   : > { %1392 = vperm.xlu2 %3152, %v558_v51   ;;  %v3042_v51 = vld [vmem:[#allocation5 + $0x78] sm:$0xff] }
 0x1e3   : > { %v2374_v27 = vadd.f32 %v2373_v61, %v2372_v4  ;;  %v3039_v61 = vld [vmem:[#allocation5 + $0x60] sm:$0xff] }
 0x1e4   : > { %1131 = vmatpush.bf16.msra.mxu2 %v1112_v12 }
 0x1e5   : > { %v2376_v31 = vadd.f32 %v2375_v60, %v2374_v27 }
 0x1e7   : > { %v3870_v5 = vpop.f32.mrf.mxu3  ;;  %v2378_v37 = vadd.f32 %v2377_v50, %v2376_v31 }
 0x1e8   : > { %1132 = vmatpush.bf16.msra.mxu2 %v1111_v10  ;;  %v3928_v10 = vld [vmem:[%s3877_s30 + $0x20] sm:$0xff] }
 0x1e9   : > { %1477 = vperm.xlu1 %3151, %v3817_v38   ;;  %v2379_v21 = vrot.slane %v2378_v37, 4 }
 0x1ea   : > { %1407 = vperm.xlu2 %3152, %v3717_v43  }
 0x1eb   : > { %v2380_v18 = vadd.f32 %v2379_v21, %v2378_v37  ;;  %v3038_v21 = vld [vmem:[#allocation5 + $0x58] sm:$0xff] }
 0x1ec   : > { %1133 = vmatpush.bf16.msra.mxu2 %v1110_v36  ;;  %v3041_v36 = vld [vmem:[#allocation5 + $0x70] sm:$0xff] }
 0x1ed   : > { %v2381_v6 = vrot.slane %v2380_v18, 2 }
 0x1ef   : > { %v3889_v32 = vpop.f32.mrf.mxu3  ;;  %1134 = vmatmul.bf16.vlgmr.msra.gmra.mxu2 %v3885_v11  ;;  %v2382_v9 = vadd.f32 %v2381_v6, %v2380_v18 }
 0x1f0   : > { %1625 = vmatpush.bf16.msrb.mxu2 %v3042_v51 }
 0x1f1   : > { %v2383_v43 = vrot.slane %v2382_v9, 1 }
 0x1f2   : > { %1422 = vperm.xlu2 %3152, %v3749_v24  }
 0x1f3   : > { %v2384_v12 = vadd.f32 %v2383_v43, %v2382_v9 }
 0x1f4   : > { %1626 = vmatpush.bf16.msrb.mxu2 %v3041_v36 }
 0x1f5   : > { %v2422_v24 = vmax.f32 %v2384_v12, 1.0 }
 0x1f7   : > { %v3897_v49 = vpop.f32.mrf.mxu3  ;;  %3158 = vrcp.f32 %v2422_v24  ;;  %v3037_v24 = vld [vmem:[#allocation5 + $0x50] sm:$0xff] }
 0x1f8   : > { %1627 = vmatpush.bf16.msrb.mxu2 %v3040_v7 }
 0x1fa   : > { %1437 = vperm.xlu2 %3152, %v3766_v17  }
 0x1fc   : > { %1628 = vmatpush.bf16.msrb.mxu2 %v3039_v61  ;;  %v3036_v61 = vld [vmem:[#allocation5 + $0x48] sm:$0xff] }
 0x1fd   : > { %v3159_v56 = vpop.eup %3158 }
 0x1ff   : > { %v3903_v3 = vpop.f32.mrf.mxu3  ;;  %1139 = vmatmul.bf16.gmra.mxu2 %v3901_v0 }
 0x200   : > { %1629 = vmatpush.bf16.msrb.mxu2 %v3038_v21 }
 0x202   : > { %1452 = vperm.xlu2 %3152, %v3779_v57  }
 0x204   : > { %1630 = vmatpush.bf16.msrb.mxu2 %v3037_v24  ;;  %v1018_v24 = vpack.c.bf16 %v3897_v49, %v3897_v49 }
 0x207   : > { %v3907_v38 = vpop.f32.mrf.mxu3 }
 0x208   : > { %1631 = vmatpush.bf16.msrb.mxu2 %v3036_v61  ;;  %v1020_v21 = vpack.c.bf16 %v3907_v38, %v3907_v38  ;;  %v1016_v61 = vpack.c.bf16 %v3870_v5, %v3870_v5 }
 0x20a   : > { %1467 = vperm.xlu2 %3152, %v3805_v19  }
 0x20f   : > { %v3913_v1 = vpop.f32.mrf.mxu3  ;;  %1144 = vmatmul.bf16.gmra.mxu2 %v3911_v14 }
 0x212   : > { %2428 = vperm.xlu2 %3152, %v3159_v56  }
 0x217   : > { %v3917_v17 = vpop.f32.mrf.mxu3 }
 0x218   : > { %v1022_v7 = vpack.c.bf16 %v3917_v17, %v3917_v17 }
 0x21f   : > { %v3922_v42 = vpop.f32.mrf.mxu3  ;;  %1149 = vmatmul.bf16.gmra.mxu2 %v3920_v55 }
 0x220   : > { %v1023_v56 = vpack.c.bf16 %v3922_v42, %v3922_v42 }
 0x227   : > { %v3925_v57 = vpop.f32.mrf.mxu3 }
 0x228   : > { %v1024_v43 = vpack.c.bf16 %v3925_v57, %v3925_v57 }
 0x22f   : > { %v3930_v25 = vpop.f32.mrf.mxu3  ;;  %1154 = vmatmul.bf16.gmra.mxu2 %v3928_v10 }
 0x230   : > { %v1025_v18 = vpack.c.bf16 %v3930_v25, %v3930_v25 }
 0x232   : > { %v1250_v36 = vunpack.c.l.b16 %v1025_v18  ;;  %v1247_v18 = vunpack.c.l.b16 %v1022_v7 }
 0x237   : > { %v3933_v19 = vpop.f32.mrf.mxu3 }
 0x238   : > { %v1026_v50 = vpack.c.bf16 %v3933_v19, %v3933_v19 }
 0x23a   : > { %v1251_v12 = vunpack.c.l.b16 %v1026_v50  ;;  %v1021_v50 = vpack.c.bf16 %v3913_v1, %v3913_v1 }
 0x23f   : > { %v3938_v26 = vpop.f32.mrf.mxu3  ;;  %1159 = vmatmul.bf16.gmra.mxu2 %v3936_v45 }
 0x240   : > { %v1027_v60 = vpack.c.bf16 %v3938_v26, %v3938_v26 }
 0x242   : > { %v1252_v9 = vunpack.c.l.b16 %v1027_v60  ;;  %v3965_v60 = vpop.f32.mrf.mxu1 }
 0x244   : > { %v1261_v51 = vpack.c.b16 %v1252_v9, %v1251_v12  ;;  %v1019_v9 = vpack.c.bf16 %v3903_v3, %v3903_v3  ;;  %v1246_v12 = vunpack.c.l.b16 %v1021_v50 }
 0x246   : > { %v1244_v7 = vunpack.c.l.b16 %v1019_v9 }
 0x247   : > { %v3941_v48 = vpop.f32.mrf.mxu3 }
 0x248   : > { %v1028_v2 = vpack.c.bf16 %v3941_v48, %v3941_v48 }
 0x24a   : > { %v1253_v31 = vunpack.c.l.b16 %v1028_v2  ;;  %v1249_v2 = vunpack.c.l.b16 %v1024_v43 }
 0x24f   : > { %v3948_v4 = vpop.f32.mrf.mxu3  ;;  %1164 = vmatmul.bf16.gmra.mxu2 %v3944_v15 }
 0x250   : > { %v1029_v27 = vpack.c.bf16 %v3948_v4, %v3948_v4 }
 0x252   : > { %v1254_v37 = vunpack.c.l.b16 %v1029_v27  ;;  %v3968_v27 = vld [vmem:[%s3877_s30 + $0x38] sm:$0xff] }
 0x253   : > { %4778 = vst [vmem:[#allocation42_spill] sm:$0xff] %v3968_v27 }
 0x254   : > { %v1262_v6 = vpack.c.b16 %v1254_v37, %v1253_v31  ;;  %v1260_v31 = vpack.c.b16 %v1250_v36, %v1249_v2  ;;  %v1248_v37 = vunpack.c.l.b16 %v1023_v56  ;;  %v1017_v56 = vpack.c.bf16 %v3889_v32, %v3889_v32  ;;  %v3981_v2 = vpop.f32.mrf.mxu1 }
 0x255   : > { %v1015_v50 = vpack.c.bf16 %v3981_v2, %v3981_v2 }
 0x256   : > { %1271 = vmatpush.bf16.msrb.mxu3 %v1262_v6  ;;  %v3035_v6 = vld [vmem:[#allocation5 + $0x40] sm:$0xff]  ;;  %v1259_v43 = vpack.c.b16 %v1248_v37, %v1247_v18  ;;  %v1242_v18 = vunpack.c.l.b16 %v1017_v56 }
 0x257   : > { %1632 = vmatpush.bf16.msrb.mxu2 %v3035_v6  ;;  %v1241_v6 = vunpack.c.l.b16 %v1016_v61  ;;  %v1240_v9 = vunpack.c.l.b16 %v1015_v50 }
 0x25a   : > { %1272 = vmatpush.bf16.msrb.mxu3 %v1261_v51  ;;  %v1245_v51 = vunpack.c.l.b16 %v1020_v21  ;;  %v1014_v21 = vpack.c.bf16 %v3965_v60, %v3965_v60 }
 0x25c   : > { %v1258_v36 = vpack.c.b16 %v1246_v12, %v1245_v51  ;;  %v1239_v12 = vunpack.c.l.b16 %v1014_v21 }
 0x25e   : > { %1273 = vmatpush.bf16.msrb.mxu3 %v1260_v31  ;;  %v1243_v31 = vunpack.c.l.b16 %v1018_v24  ;;  %v1255_v51 = vpack.c.b16 %v1240_v9, %v1239_v12  ;;  %v3992_v24 = vpop.permute.xlu0 %1322 }
 0x25f   : > { %1169 = vmatmul.bf16.gmra.mxu2 %v3968_v27  ;;  %v3990_v27 = vld [vmem:[%s3877_s30 + $0x40] sm:$0xff] }
 0x260   : > { %v1257_v37 = vpack.c.b16 %v1244_v7, %v1243_v31 }
 0x262   : > { %1274 = vmatpush.bf16.msrb.mxu3 %v1259_v43  ;;  %v1256_v43 = vpack.c.b16 %v1242_v18, %v1241_v6 }
 0x266   : > { %1275 = vmatpush.bf16.msrb.mxu3 %v1258_v36  ;;  %v3998_v50 = vpop.permute.xlu0 %1327 }
 0x26a   : > { %1276 = vmatpush.bf16.msrb.mxu3 %v1257_v37 }
 0x26e   : > { %1277 = vmatpush.bf16.msrb.mxu3 %v1256_v43  ;;  %v4012_v43 = vpop.permute.xlu1 %1332 }
 0x272   : > { %v1135_v36 = vpop.f32.mrf.mxu2  ;;  %1278 = vmatpush.bf16.msrb.mxu3 %v1255_v51 }
 0x273   : > { %v1136_v56 = vadd.f32 %v1135_v36, %v3619_v13  ;;  %v4010_v13 = vld [vmem:[%s3877_s30 + $0x48] sm:$0xff] }
 0x275   : > { %1279 = vmatmul.bf16.vlgmr.msrb.gmra.mxu3 %v3990_v27  ;;  %v1480_v61 = vmul.f32 %v3992_v24, %v1136_v56 }
 0x276   : > { %v4018_v51 = vpop.permute.xlu1 %1337 }
 0x277   : > { %v4002_v18 = vadd.f32 %v1480_v61, %v3543_v28 }
 0x27a   : > { %v1137_v7 = vpop.f32.mrf.mxu2 }
 0x27b   : > { %v1138_v31 = vadd.f32 %v1137_v7, %v3623_v16 }
 0x27d   : > { %v1481_v37 = vmul.f32 %v3998_v50, %v1138_v31  ;;  %v4032_v31 = vpop.permute.xlu2 %1342 }
 0x27f   : > { %v4005_v21 = vadd.f32 %v1481_v37, %v3546_v29 }
 0x281   : > { %v1544_v6 = vpack.c.bf16 %v4005_v21, %v4002_v18 }
 0x282   : > { %v1140_v9 = vpop.f32.mrf.mxu2 }
 0x283   : > { %1633 = vmatmul.bf16.vlgmr.msrb.gmra.mxu2 %v1544_v6  ;;  %v1141_v16 = vadd.f32 %v1140_v9, %v3631_v20  ;;  %v4030_v20 = vld [vmem:[%s3877_s30 + $0x50] sm:$0xff] }
 0x285   : > { %1284 = vmatmul.bf16.gmra.mxu3 %v4010_v13  ;;  %v1482_v28 = vmul.f32 %v4012_v43, %v1141_v16  ;;  %v4038_v9 = vpop.permute.xlu2 %1347 }
 0x287   : > { %v4022_v56 = vadd.f32 %v1482_v28, %v3552_v34 }
 0x28a   : > { %v1142_v12 = vpop.f32.mrf.mxu2 }
 0x28b   : > { %v1143_v29 = vadd.f32 %v1142_v12, %v3635_v23 }
 0x28d   : > { %v1483_v36 = vmul.f32 %v4018_v51, %v1143_v29 }
 0x28f   : > { %v4025_v7 = vadd.f32 %v1483_v36, %v3555_v35 }
 0x291   : > { %v1545_v61 = vpack.c.bf16 %v4025_v7, %v4022_v56 }
 0x292   : > { %v1145_v37 = vpop.f32.mrf.mxu2 }
 0x293   : > { %1638 = vmatmul.bf16.gmra.mxu2 %v1545_v61  ;;  %v1146_v23 = vadd.f32 %v1145_v37, %v3643_v30  ;;  %v4050_v30 = vld [vmem:[%s3877_s30 + $0x58] sm:$0xff]  ;;  %v4054_v61 = vpop.permute.xlu0 %1352 }
 0x295   : > { %1289 = vmatmul.bf16.gmra.mxu3 %v4030_v20  ;;  %v1484_v34 = vmul.f32 %v4032_v31, %v1146_v23  ;;  %v4058_v23 = vpop.permute.xlu1 %1357 }
 0x297   : > { %v4042_v12 = vadd.f32 %v1484_v34, %v3561_v40 }
 0x29a   : > { %v1147_v6 = vpop.f32.mrf.mxu2 }
 0x29b   : > { %v1148_v35 = vadd.f32 %v1147_v6, %v3647_v33 }
 0x29d   : > { %v1485_v16 = vmul.f32 %v4038_v9, %v1148_v35 }
 0x29f   : > { %v4045_v28 = vadd.f32 %v1485_v16, %v3564_v41  ;;  %v4070_v16 = vld [vmem:[%s3877_s30 + $0x60] sm:$0xff] }
 0x2a1   : > { %v1546_v29 = vpack.c.bf16 %v4045_v28, %v4042_v12 }
 0x2a2   : > { %v1150_v36 = vpop.f32.mrf.mxu2 }
 0x2a3   : > { %1643 = vmatmul.bf16.gmra.mxu2 %v1546_v29  ;;  %v1151_v33 = vadd.f32 %v1150_v36, %v3655_v39  ;;  %v4074_v36 = vpop.permute.xlu2 %1362 }
 0x2a5   : > { %1294 = vmatmul.bf16.gmra.mxu3 %v4050_v30  ;;  %v1486_v40 = vmul.f32 %v4054_v61, %v1151_v33 }
 0x2a7   : > { %v4062_v34 = vadd.f32 %v1486_v40, %v3570_v46 }
 0x2aa   : > { %v1152_v37 = vpop.f32.mrf.mxu2 }
 0x2ab   : > { %v1153_v41 = vadd.f32 %v1152_v37, %v3665_v44  ;;  %v4078_v37 = vpop.permute.xlu0 %1367 }
 0x2ad   : > { %v1487_v6 = vmul.f32 %v4058_v23, %v1153_v41 }
 0x2af   : > { %v4065_v35 = vadd.f32 %v1487_v6, %v3573_v47 }
 0x2b1   : > { %v1547_v39 = vpack.c.bf16 %v4065_v35, %v4062_v34 }
 0x2b2   : > { %v1155_v29 = vpop.f32.mrf.mxu2 }
 0x2b3   : > { %1648 = vmatmul.bf16.gmra.mxu2 %v1547_v39  ;;  %v1156_v44 = vadd.f32 %v1155_v29, %v3674_v54  ;;  %v4090_v39 = vld [vmem:[%s3877_s30 + $0x68] sm:$0xff] }
 0x2b4   : > { %4779 = vst [vmem:[#allocation43_spill] sm:$0xff] %v4090_v39 }
 0x2b5   : > { %1299 = vmatmul.bf16.gmra.mxu3 %v4070_v16  ;;  %v1488_v46 = vmul.f32 %v4074_v36, %v1156_v44  ;;  %v4094_v44 = vpop.permute.xlu1 %1372 }
 0x2b6   : > { %4780 = vst [vmem:[#allocation44_spill] sm:$0xff] %v4094_v44 }
 0x2b7   : > { %v4082_v41 = vadd.f32 %v1488_v46, %v3579_v52  ;;  %v4098_v46 = vpop.permute.xlu2 %1377 }
 0x2b8   : > { %4781 = vst [vmem:[#allocation45_spill] sm:$0xff] %v4098_v46 }
 0x2ba   : > { %v1157_v33 = vpop.f32.mrf.mxu2 }
 0x2bb   : > { %v1158_v47 = vadd.f32 %v1157_v33, %v3681_v62 }
 0x2bd   : > { %v1489_v40 = vmul.f32 %v4078_v37, %v1158_v47 }
 0x2bf   : > { %v4085_v6 = vadd.f32 %v1489_v40, %v3582_v53 }
 0x2c1   : > { %v1548_v54 = vpack.c.bf16 %v4085_v6, %v4082_v41 }
 0x2c2   : > { %v1160_v29 = vpop.f32.mrf.mxu2 }
 0x2c3   : > { %1653 = vmatmul.bf16.gmra.mxu2 %v1548_v54  ;;  %v1161_v62 = vadd.f32 %v1160_v29, %v3693_v8  ;;  %v4110_v29 = vld [vmem:[%s3877_s30 + $0x70] sm:$0xff] }
 0x2c4   : > { %4784 = vst [vmem:[#allocation48_spill] sm:$0xff] %v4110_v29 }
 0x2c5   : > { %1304 = vmatmul.bf16.gmra.mxu3 %v4090_v39  ;;  %v1490_v52 = vmul.f32 %v4094_v44, %v1161_v62  ;;  %v4114_v62 = vpop.permute.xlu0 %1382  ;;  %v3045_v44 = vld [vmem:[#allocation7 + $0x10] sm:$0xff] }
 0x2c6   : > { %4785 = vst [vmem:[#allocation49_spill] sm:$0xff] %v4114_v62 }
 0x2c7   : > { %v4102_v40 = vadd.f32 %v1490_v52, %v3588_v58  ;;  %v4786_v52 = vld [vmem:[#allocation37_spill] sm:$0xff] }
 0x2c9   : > { %4782 = vst [vmem:[#allocation46_spill] sm:$0xff] %v4102_v40 }
 0x2ca   : > { %v1162_v33 = vpop.f32.mrf.mxu2 }
 0x2cb   : > { %v1163_v53 = vadd.f32 %v1162_v33, %v3703_v22 }
 0x2cd   : > { %v1491_v47 = vmul.f32 %v4098_v46, %v1163_v53  ;;  %v4118_v53 = vpop.permute.xlu1 %1387  ;;  %v4790_v46 = vld [vmem:[#allocation20_spill] sm:$0xff] }
 0x2ce   : > { %4787 = vst [vmem:[#allocation37_spill] sm:$0xff] %v4118_v53 }
 0x2cf   : > { %v4105_v54 = vadd.f32 %v1491_v47, %v3591_v59 }
 0x2d1   : > { %4783 = vst [vmem:[#allocation47_spill] sm:$0xff] %v4105_v54  ;;  %v1549_v8 = vpack.c.bf16 %v4105_v54, %v4102_v40  ;;  %v4788_v54 = vld [vmem:[#allocation19_spill] sm:$0xff] }
 0x2d2   : > { %v1165_v39 = vpop.f32.mrf.mxu2 }
 0x2d3   : > { %1658 = vmatmul.bf16.gmra.mxu2 %v1549_v8  ;;  %v1166_v22 = vadd.f32 %v1165_v39, %v3731_v63  ;;  %v4130_v39 = vld [vmem:[%s3877_s30 + $0x78] sm:$0xff]  ;;  %s3300_s30 = scalar_lea.hbm %s4635_s10, 4 }
 0x2d4   : > { %4792 = vst [vmem:[#allocation50_spill] sm:$0xff] %v4130_v39  ;;  %p3302_p4 = scmp.lt.s32.totalorder %s3300_s30, %s3296_s27 }
 0x2d5   : > { %1309 = vmatmul.bf16.gmra.mxu3 %v4110_v29  ;;  %v1492_v58 = vmul.f32 %v4114_v62, %v1166_v22  ;;  %v4793_v22 = vld [vmem:[#allocation40_spill] sm:$0xff]  ;;  %v4799_v62 = vld [vmem:[#allocation22_spill] sm:$0xff] }
 0x2d6   : > { %p3303_p7 = por %p3302_p4, %p3301_p3 }
 0x2d7   : > { %v4122_v40 = vadd.f32 %v1492_v58, %v4788_v54  ;;  %v4795_v58 = vld [vmem:[#allocation41_spill] sm:$0xff] }
 0x2d8   : > { %p3304_p8 = pnand %p3303_p7, %p3299_p2 }
 0x2d9   : > { %4789 = vst [vmem:[#allocation19_spill] sm:$0xff] %v4122_v40 }
 0x2da   : > { %v1167_v33 = vpop.f32.mrf.mxu2 }
 0x2db   : > { %v1168_v59 = vadd.f32 %v1167_v33, %v4786_v52  ;;  %v4134_v52 = vpop.permute.xlu2 %1392 }
 0x2dc   : > { %4794 = vst [vmem:[#allocation40_spill] sm:$0xff] %v4134_v52 }
 0x2dd   : > { %v1493_v47 = vmul.f32 %v4118_v53, %v1168_v59 }
 0x2df   : > { %v4125_v8 = vadd.f32 %v1493_v47, %v4790_v46  ;;  %v4138_v46 = vpop.permute.xlu0 %1397 }
 0x2e0   : > { %4796 = vst [vmem:[#allocation41_spill] sm:$0xff] %v4138_v46 }
 0x2e1   : > { %4791 = vst [vmem:[#allocation20_spill] sm:$0xff] %v4125_v8  ;;  %v1550_v63 = vpack.c.bf16 %v4125_v8, %v4122_v40  ;;  %v4797_v8 = vld [vmem:[#allocation21_spill] sm:$0xff] }
 0x2e2   : > { %v1170_v29 = vpop.f32.mrf.mxu2 }
 0x2e3   : > { %1663 = vmatmul.bf16.gmra.mxu2 %v1550_v63  ;;  %v1171_v33 = vadd.f32 %v1170_v29, %v4793_v22 }
 0x2e5   : > { %1314 = vmatmul.bf16.gmra.mxu3 %v4130_v39  ;;  %v1494_v54 = vmul.f32 %v4134_v52, %v1171_v33  ;;  %v4150_v33 = vpop.permute.xlu1 %1402 }
 0x2e6   : > { %4801 = vst [vmem:[#allocation51_spill] sm:$0xff] %v4150_v33 }
 0x2e7   : > { %v4142_v40 = vadd.f32 %v1494_v54, %v4797_v8 }
 0x2e9   : > { %4798 = vst [vmem:[#allocation21_spill] sm:$0xff] %v4142_v40 }
 0x2ea   : > { %v1172_v59 = vpop.f32.mrf.mxu2 }
 0x2eb   : > { %v1173_v53 = vadd.f32 %v1172_v59, %v4795_v58 }
 0x2ed   : > { %v1495_v47 = vmul.f32 %v4138_v46, %v1173_v53  ;;  %v4154_v46 = vpop.permute.xlu2 %1407 }
 0x2ee   : > { %4802 = vst [vmem:[#allocation52_spill] sm:$0xff] %v4154_v46 }
 0x2ef   : > { %v4145_v63 = vadd.f32 %v1495_v47, %v4799_v62  ;;  %v4803_v62 = vld [vmem:[#allocation23_spill] sm:$0xff]  ;;  %v4805_v47 = vld [vmem:[#allocation24_spill] sm:$0xff] }
 0x2f1   : > { %4800 = vst [vmem:[#allocation22_spill] sm:$0xff] %v4145_v63  ;;  %v1551_v29 = vpack.c.bf16 %v4145_v63, %v4142_v40 }
 0x2f3   : > { %1668 = vmatmul.bf16.gmra.mxu2 %v1551_v29 }
 0x2f8   : > { %v1280_v22 = vpop.f32.mrf.mxu3 }
 0x2f9   : > { %v1281_v39 = vadd.f32 %v1280_v22, %v3965_v60 }
 0x2fb   : > { %v1496_v58 = vmul.f32 %v4150_v33, %v1281_v39 }
 0x2fd   : > { %v4158_v54 = vadd.f32 %v1496_v58, %v4803_v62 }
 0x2ff   : > { %4804 = vst [vmem:[#allocation23_spill] sm:$0xff] %v4158_v54 }
 0x300   : > { %v1282_v59 = vpop.f32.mrf.mxu3 }
 0x301   : > { %v1283_v53 = vadd.f32 %v1282_v59, %v3981_v2  ;;  %v4170_v59 = vpop.permute.xlu0 %1412 }
 0x302   : > { %4807 = vst [vmem:[#allocation53_spill] sm:$0xff] %v4170_v59 }
 0x303   : > { %v1497_v8 = vmul.f32 %v4154_v46, %v1283_v53  ;;  %v4809_v46 = vld [vmem:[#allocation25_spill] sm:$0xff] }
 0x305   : > { %v4161_v63 = vadd.f32 %v1497_v8, %v4805_v47  ;;  %v4174_v8 = vpop.permute.xlu1 %1417 }
 0x306   : > { %v4163_v29 = vpop.f32.mrf.mxu2  ;;  %4808 = vst [vmem:[#allocation54_spill] sm:$0xff] %v4174_v8 }
 0x307   : > { %4806 = vst [vmem:[#allocation24_spill] sm:$0xff] %v4161_v63  ;;  %v1552_v60 = vpack.c.bf16 %v4161_v63, %v4158_v54  ;;  %v4811_v63 = vld [vmem:[#allocation26_spill] sm:$0xff] }
 0x308   : > { %v1285_v22 = vpop.f32.mrf.mxu3 }
 0x309   : > { %1673 = vmatmul.bf16.gmra.mxu2 %v1552_v60  ;;  %v1286_v39 = vadd.f32 %v1285_v22, %v3870_v5 }
 0x30b   : > { %v1498_v58 = vmul.f32 %v4170_v59, %v1286_v39 }
 0x30d   : > { %v4178_v33 = vadd.f32 %v1498_v58, %v4809_v46 }
 0x30e   : > { %v4168_v2 = vpop.f32.mrf.mxu2 }
 0x30f   : > { %4810 = vst [vmem:[#allocation25_spill] sm:$0xff] %v4178_v33 }
 0x310   : > { %v1287_v53 = vpop.f32.mrf.mxu3 }
 0x311   : > { %v1288_v62 = vadd.f32 %v1287_v53, %v3889_v32  ;;  %v4190_v53 = vpop.permute.xlu2 %1422 }
 0x312   : > { %4813 = vst [vmem:[#allocation55_spill] sm:$0xff] %v4190_v53 }
 0x313   : > { %v1499_v47 = vmul.f32 %v4174_v8, %v1288_v62  ;;  %v4815_v8 = vld [vmem:[#allocation27_spill] sm:$0xff] }
 0x315   : > { %v4181_v60 = vadd.f32 %v1499_v47, %v4811_v63  ;;  %v4194_v63 = vpop.permute.xlu0 %1427 }
 0x316   : > { %v4183_v5 = vpop.f32.mrf.mxu2  ;;  %4814 = vst [vmem:[#allocation56_spill] sm:$0xff] %v4194_v63 }
 0x317   : > { %4812 = vst [vmem:[#allocation26_spill] sm:$0xff] %v4181_v60  ;;  %v1553_v22 = vpack.c.bf16 %v4181_v60, %v4178_v33  ;;  %v4817_v60 = vld [vmem:[#allocation28_spill] sm:$0xff] }
 0x318   : > { %v1290_v54 = vpop.f32.mrf.mxu3 }
 0x319   : > { %1678 = vmatmul.bf16.gmra.mxu2 %v1553_v22  ;;  %v1291_v39 = vadd.f32 %v1290_v54, %v3897_v49 }
 0x31b   : > { %v1500_v46 = vmul.f32 %v4190_v53, %v1291_v39 }
 0x31d   : > { %v4198_v59 = vadd.f32 %v1500_v46, %v4815_v8 }
 0x31e   : > { %v4188_v32 = vpop.f32.mrf.mxu2 }
 0x31f   : > { %4816 = vst [vmem:[#allocation27_spill] sm:$0xff] %v4198_v59 }
 0x320   : > { %v1292_v62 = vpop.f32.mrf.mxu3 }
 0x321   : > { %v1293_v58 = vadd.f32 %v1292_v62, %v3903_v3  ;;  %v4210_v62 = vpop.permute.xlu1 %1432 }
 0x322   : > { %4819 = vst [vmem:[#allocation57_spill] sm:$0xff] %v4210_v62 }
 0x323   : > { %v1501_v47 = vmul.f32 %v4194_v63, %v1293_v58  ;;  %v4821_v63 = vld [vmem:[#allocation29_spill] sm:$0xff] }
 0x325   : > { %v4201_v22 = vadd.f32 %v1501_v47, %v4817_v60  ;;  %v4214_v60 = vpop.permute.xlu2 %1437 }
 0x326   : > { %v4203_v49 = vpop.f32.mrf.mxu2  ;;  %4820 = vst [vmem:[#allocation58_spill] sm:$0xff] %v4214_v60 }
 0x327   : > { %4818 = vst [vmem:[#allocation28_spill] sm:$0xff] %v4201_v22  ;;  %v1554_v54 = vpack.c.bf16 %v4201_v22, %v4198_v59  ;;  %v4823_v22 = vld [vmem:[#allocation30_spill] sm:$0xff] }
 0x328   : > { %v1295_v33 = vpop.f32.mrf.mxu3 }
 0x329   : > { %1683 = vmatmul.bf16.gmra.mxu2 %v1554_v54  ;;  %v1296_v39 = vadd.f32 %v1295_v33, %v3907_v38 }
 0x32b   : > { %v1502_v8 = vmul.f32 %v4210_v62, %v1296_v39 }
 0x32d   : > { %v4218_v53 = vadd.f32 %v1502_v8, %v4821_v63 }
 0x32e   : > { %v4208_v3 = vpop.f32.mrf.mxu2 }
 0x32f   : > { %4822 = vst [vmem:[#allocation29_spill] sm:$0xff] %v4218_v53 }
 0x330   : > { %v1297_v58 = vpop.f32.mrf.mxu3 }
 0x331   : > { %v1298_v46 = vadd.f32 %v1297_v58, %v3913_v1  ;;  %v4230_v58 = vpop.permute.xlu0 %1442 }
 0x332   : > { %4825 = vst [vmem:[#allocation59_spill] sm:$0xff] %v4230_v58 }
 0x333   : > { %v1503_v47 = vmul.f32 %v4214_v60, %v1298_v46  ;;  %v4827_v60 = vld [vmem:[#allocation31_spill] sm:$0xff] }
 0x335   : > { %v4221_v54 = vadd.f32 %v1503_v47, %v4823_v22  ;;  %v4234_v22 = vpop.permute.xlu1 %1447 }
 0x336   : > { %v4223_v38 = vpop.f32.mrf.mxu2  ;;  %4826 = vst [vmem:[#allocation60_spill] sm:$0xff] %v4234_v22 }
 0x337   : > { %4824 = vst [vmem:[#allocation30_spill] sm:$0xff] %v4221_v54  ;;  %v1555_v33 = vpack.c.bf16 %v4221_v54, %v4218_v53  ;;  %v4829_v54 = vld [vmem:[#allocation32_spill] sm:$0xff] }
 0x338   : > { %v1300_v59 = vpop.f32.mrf.mxu3 }
 0x339   : > { %1688 = vmatmul.bf16.gmra.mxu2 %v1555_v33  ;;  %v1301_v39 = vadd.f32 %v1300_v59, %v3917_v17 }
 0x33b   : > { %v1504_v63 = vmul.f32 %v4230_v58, %v1301_v39 }
 0x33d   : > { %v4238_v62 = vadd.f32 %v1504_v63, %v4827_v60 }
 0x33e   : > { %v4228_v1 = vpop.f32.mrf.mxu2 }
 0x33f   : > { %4828 = vst [vmem:[#allocation31_spill] sm:$0xff] %v4238_v62 }
 0x340   : > { %v1302_v46 = vpop.f32.mrf.mxu3 }
 0x341   : > { %v1303_v8 = vadd.f32 %v1302_v46, %v3922_v42  ;;  %v4250_v46 = vpop.permute.xlu2 %1452 }
 0x342   : > { %4831 = vst [vmem:[#allocation61_spill] sm:$0xff] %v4250_v46 }
 0x343   : > { %v1505_v47 = vmul.f32 %v4234_v22, %v1303_v8  ;;  %v4833_v22 = vld [vmem:[#allocation33_spill] sm:$0xff] }
 0x345   : > { %v4241_v33 = vadd.f32 %v1505_v47, %v4829_v54  ;;  %v4254_v54 = vpop.permute.xlu0 %1457 }
 0x346   : > { %v4243_v17 = vpop.f32.mrf.mxu2  ;;  %4832 = vst [vmem:[#allocation62_spill] sm:$0xff] %v4254_v54 }
 0x347   : > { %4830 = vst [vmem:[#allocation32_spill] sm:$0xff] %v4241_v33  ;;  %v1556_v59 = vpack.c.bf16 %v4241_v33, %v4238_v62  ;;  %v4835_v33 = vld [vmem:[#allocation34_spill] sm:$0xff] }
 0x348   : > { %v1305_v53 = vpop.f32.mrf.mxu3 }
 0x349   : > { %1693 = vmatmul.bf16.gmra.mxu2 %v1556_v59  ;;  %v1306_v39 = vadd.f32 %v1305_v53, %v3925_v57 }
 0x34b   : > { %v1506_v60 = vmul.f32 %v4250_v46, %v1306_v39 }
 0x34d   : > { %v4258_v58 = vadd.f32 %v1506_v60, %v4833_v22 }
 0x34e   : > { %v4248_v42 = vpop.f32.mrf.mxu2 }
 0x34f   : > { %4834 = vst [vmem:[#allocation33_spill] sm:$0xff] %v4258_v58 }
 0x350   : > { %v1307_v8 = vpop.f32.mrf.mxu3 }
 0x351   : > { %v1308_v63 = vadd.f32 %v1307_v8, %v3930_v25  ;;  %v4270_v8 = vpop.permute.xlu1 %1462 }
 0x352   : > { %4838 = vst [vmem:[#allocation64_spill] sm:$0xff] %v4270_v8 }
 0x353   : > { %v1507_v47 = vmul.f32 %v4254_v54, %v1308_v63  ;;  %v4840_v54 = vld [vmem:[#allocation35_spill] sm:$0xff] }
 0x355   : > { %v4261_v59 = vadd.f32 %v1507_v47, %v4835_v33  ;;  %v4274_v33 = vpop.permute.xlu2 %1467 }
 0x356   : > { %v4263_v57 = vpop.f32.mrf.mxu2  ;;  %4839 = vst [vmem:[#allocation65_spill] sm:$0xff] %v4274_v33 }
 0x357   : > { %4836 = vst [vmem:[#allocation34_spill] sm:$0xff] %v4261_v59  ;;  %v1557_v53 = vpack.c.bf16 %v4261_v59, %v4258_v58  ;;  %v4842_v59 = vld [vmem:[#allocation36_spill] sm:$0xff] }
 0x358   : > { %v1310_v62 = vpop.f32.mrf.mxu3 }
 0x359   : > { %1698 = vmatmul.bf16.gmra.mxu2 %v1557_v53  ;;  %v1311_v39 = vadd.f32 %v1310_v62, %v3933_v19 }
 0x35b   : > { %v1508_v22 = vmul.f32 %v4270_v8, %v1311_v39 }
 0x35d   : > { %v4278_v46 = vadd.f32 %v1508_v22, %v4840_v54 }
 0x35e   : > { %v4268_v25 = vpop.f32.mrf.mxu2 }
 0x35f   : > { %4837 = vst [vmem:[#allocation63_spill] sm:$0xff] %v4268_v25 }
 0x360   : > { %v1312_v63 = vpop.f32.mrf.mxu3  ;;  %4841 = vst [vmem:[#allocation35_spill] sm:$0xff] %v4278_v46 }
 0x361   : > { %v1313_v60 = vadd.f32 %v1312_v63, %v3938_v26  ;;  %v4290_v63 = vpop.permute.xlu0 %1472 }
 0x362   : > { %4846 = vst [vmem:[#allocation68_spill] sm:$0xff] %v4290_v63 }
 0x363   : > { %v1509_v47 = vmul.f32 %v4274_v33, %v1313_v60  ;;  %v4848_v33 = vld [vmem:[#allocation38_spill] sm:$0xff] }
 0x365   : > { %v4281_v53 = vadd.f32 %v1509_v47, %v4842_v59  ;;  %v4294_v59 = vpop.permute.xlu1 %1477 }
 0x366   : > { %v4283_v19 = vpop.f32.mrf.mxu2  ;;  %4847 = vst [vmem:[#allocation69_spill] sm:$0xff] %v4294_v59 }
 0x367   : > { %4843 = vst [vmem:[#allocation36_spill] sm:$0xff] %v4281_v53  ;;  %v1558_v62 = vpack.c.bf16 %v4281_v53, %v4278_v46  ;;  %v4850_v53 = vld [vmem:[#allocation39_spill] sm:$0xff] }
 0x368   : > { %4844 = vst [vmem:[#allocation66_spill] sm:$0xff] %v4283_v19  ;;  %v1315_v58 = vpop.f32.mrf.mxu3 }
 0x369   : > { %1703 = vmatmul.bf16.gmra.mxu2 %v1558_v62  ;;  %v1316_v39 = vadd.f32 %v1315_v58, %v3941_v48 }
 0x36b   : > { %v1510_v54 = vmul.f32 %v4290_v63, %v1316_v39  ;;  %v1723_v63 = vpack.c.bf16 %v4248_v42, %v4248_v42 }
 0x36d   : > { %v4298_v8 = vadd.f32 %v1510_v54, %v4848_v33 }
 0x36e   : > { %v4288_v26 = vpop.f32.mrf.mxu2 }
 0x36f   : > { %4845 = vst [vmem:[#allocation67_spill] sm:$0xff] %v4288_v26 }
 0x370   : > { %v1317_v60 = vpop.f32.mrf.mxu3  ;;  %4849 = vst [vmem:[#allocation38_spill] sm:$0xff] %v4298_v8 }
 0x371   : > { %v1318_v22 = vadd.f32 %v1317_v60, %v3948_v4  ;;  %v1727_v60 = vpack.c.bf16 %v4288_v26, %v4288_v26 }
 0x373   : > { %v1511_v47 = vmul.f32 %v4294_v59, %v1318_v22 }
 0x375   : > { %v4301_v62 = vadd.f32 %v1511_v47, %v4850_v53  ;;  %v1726_v53 = vpack.c.bf16 %v4283_v19, %v4283_v19  ;;  %v1725_v47 = vpack.c.bf16 %v4268_v25, %v4268_v25 }
 0x376   : > { %v4303_v48 = vpop.f32.mrf.mxu2 }
 0x377   : > { %4851 = vst [vmem:[#allocation39_spill] sm:$0xff] %v4301_v62  ;;  %v1559_v58 = vpack.c.bf16 %v4301_v62, %v4298_v8  ;;  %v1728_v39 = vpack.c.bf16 %v4303_v48, %v4303_v48  ;;  %v1724_v8 = vpack.c.bf16 %v4263_v57, %v4263_v57  ;;  %v1774_v59 = vunpack.c.l.b16 %v1726_v53 }
 0x378   : > { %4852 = vst [vmem:[#allocation70_spill] sm:$0xff] %v4303_v48  ;;  %v1773_v46 = vunpack.c.l.b16 %v1725_v47 }
 0x379   : > { %1708 = vmatmul.bf16.gmra.mxu2 %v1559_v58  ;;  %v1776_v54 = vunpack.c.l.b16 %v1728_v39  ;;  %v1775_v58 = vunpack.c.l.b16 %v1727_v60  ;;  %v1772_v39 = vunpack.c.l.b16 %v1724_v8  ;;  %v1771_v60 = vunpack.c.l.b16 %v1723_v63 }
 0x37b   : > { %v1784_v40 = vpack.c.b16 %v1775_v58, %v1774_v59  ;;  %v1719_v59 = vpack.c.bf16 %v4208_v3, %v4208_v3 }
 0x37d   : > { %v1767_v63 = vunpack.c.l.b16 %v1719_v59 }
 0x37e   : > { %v4309_v4 = vpop.f32.mrf.mxu2 }
 0x37f   : > { %4853 = vst [vmem:[#allocation71_spill] sm:$0xff] %v4309_v4  ;;  %v1729_v33 = vpack.c.bf16 %v4309_v4, %v4309_v4  ;;  %v1722_v4 = vpack.c.bf16 %v4243_v17, %v4243_v17 }
 0x381   : > { %v1777_v22 = vunpack.c.l.b16 %v1729_v33  ;;  %v1721_v33 = vpack.c.bf16 %v4228_v1, %v4228_v1  ;;  %v1770_v53 = vunpack.c.l.b16 %v1722_v4  ;;  %v1716_v4 = vpack.c.bf16 %v4183_v5, %v4183_v5 }
 0x383   : > { %v1785_v62 = vpack.c.b16 %v1777_v22, %v1776_v54  ;;  %v1783_v54 = vpack.c.b16 %v1773_v46, %v1772_v39  ;;  %v1769_v47 = vunpack.c.l.b16 %v1721_v33  ;;  %v1782_v58 = vpack.c.b16 %v1771_v60, %v1770_v53 }
 0x384   : > { %v1717_v46 = vpack.c.bf16 %v4188_v32, %v4188_v32  ;;  %v1715_v33 = vpack.c.bf16 %v4168_v2, %v4168_v2 }
 0x385   : > { %1794 = vmatpush.bf16.msra.mxu3 %v1785_v62  ;;  %v1720_v62 = vpack.c.bf16 %v4223_v38, %v4223_v38 }
 0x386   : > { %v1765_v60 = vunpack.c.l.b16 %v1717_v46  ;;  %v1763_v48 = vunpack.c.l.b16 %v1715_v33 }
 0x387   : > { %v1768_v8 = vunpack.c.l.b16 %v1720_v62  ;;  %v1714_v62 = vpack.c.bf16 %v4163_v29, %v4163_v29 }
 0x389   : > { %1795 = vmatpush.bf16.msra.mxu3 %v1784_v40  ;;  %v1718_v40 = vpack.c.bf16 %v4203_v49, %v4203_v49  ;;  %v1781_v39 = vpack.c.b16 %v1769_v47, %v1768_v8  ;;  %v1762_v8 = vunpack.c.l.b16 %v1714_v62  ;;  %v3048_v62 = vld [vmem:[#allocation7 + $0x28] sm:$0xff] }
 0x38b   : > { %v1778_v26 = vpack.c.b16 %v1763_v48, %v1762_v8 }
 0x38c   : > { %v4327_v22 = vpop.f32.mrf.mxu2 }
 0x38d   : > { %1796 = vmatpush.bf16.msra.mxu3 %v1783_v54  ;;  %v1766_v54 = vunpack.c.l.b16 %v1718_v40 }
 0x38f   : > { %v1780_v53 = vpack.c.b16 %v1767_v63, %v1766_v54 }
 0x391   : > { %1797 = vmatpush.bf16.msra.mxu3 %v1782_v58  ;;  %v1764_v58 = vunpack.c.l.b16 %v1716_v4 }
 0x393   : > { %v1779_v59 = vpack.c.b16 %v1765_v60, %v1764_v58  ;;  %v3050_v60 = vld [vmem:[#allocation7 + $0x38] sm:$0xff]  ;;  %v3047_v58 = vld [vmem:[#allocation7 + $0x20] sm:$0xff] }
 0x394   : > { %v4337_v52 = vpop.f32.mrf.mxu2  ;;  %2088 = vmatpush.bf16.msrb.mxu1 %v3050_v60 }
 0x395   : > { %1798 = vmatpush.bf16.msra.mxu3 %v1781_v39 }
 0x399   : > { %1799 = vmatpush.bf16.msra.mxu3 %v1780_v53 }
 0x39c   : > { %v4345_v47 = vpop.f32.mrf.mxu2 }
 0x39d   : > { %1800 = vmatpush.bf16.msra.mxu3 %v1779_v59 }
 0x3a1   : > { %1801 = vmatpush.bf16.msra.mxu3 %v1778_v26 }
 0x3a4   : > { %v4347_v40 = vpop.f32.mrf.mxu2  ;;  %1802 = vmatmul.bf16.vlgmr.msra.gmra.mxu3 %v3885_v11 }
 0x3ac   : > { %v4350_v39 = vpop.f32.mrf.mxu2 }
 0x3b4   : > { %v4352_v46 = vpop.f32.mrf.mxu2  ;;  %1807 = vmatmul.bf16.gmra.mxu3 %v3901_v0 }
 0x3bc   : > { %v4355_v63 = vpop.f32.mrf.mxu2 }
 0x3c4   : > { %v4357_v4 = vpop.f32.mrf.mxu2  ;;  %1812 = vmatmul.bf16.gmra.mxu3 %v3911_v14  ;;  %v3049_v14 = vld [vmem:[#allocation7 + $0x30] sm:$0xff] }
 0x3c5   : > { %2089 = vmatpush.bf16.msrb.mxu1 %v3049_v14 }
 0x3c9   : > { %2090 = vmatpush.bf16.msrb.mxu1 %v3048_v62  ;;  %v3046_v62 = vld [vmem:[#allocation7 + $0x18] sm:$0xff] }
 0x3cc   : > { %v4360_v54 = vpop.f32.mrf.mxu2 }
 0x3cd   : > { %2091 = vmatpush.bf16.msrb.mxu1 %v3047_v58 }
 0x3d1   : > { %2092 = vmatpush.bf16.msrb.mxu1 %v3046_v62 }
 0x3d4   : > { %v4362_v48 = vpop.f32.mrf.mxu2  ;;  %1817 = vmatmul.bf16.gmra.mxu3 %v3920_v55 }
 0x3d5   : > { %v1739_v58 = vpack.c.bf16 %v4362_v48, %v4362_v48  ;;  %2093 = vmatpush.bf16.msrb.mxu1 %v3045_v44  ;;  %v1735_v44 = vpack.c.bf16 %v4352_v46, %v4352_v46 }
 0x3dc   : > { %v4365_v26 = vpop.f32.mrf.mxu2 }
 0x3e4   : > { %v4367_v11 = vpop.f32.mrf.mxu2  ;;  %1822 = vmatmul.bf16.gmra.mxu3 %v3928_v10 }
 0x3e5   : > { %4854 = vst [vmem:[#allocation72_spill] sm:$0xff] %v4367_v11 }
 0x3ec   : > { %v4370_v33 = vpop.f32.mrf.mxu2 }
 0x3ed   : > { %4855 = vst [vmem:[#allocation73_spill] sm:$0xff] %v4370_v33  ;;  %v1742_v8 = vpack.c.bf16 %v4370_v33, %v4370_v33 }
 0x3f4   : > { %v4372_v0 = vpop.f32.mrf.mxu2  ;;  %1827 = vmatmul.bf16.gmra.mxu3 %v3936_v45 }
 0x3f5   : > { %4856 = vst [vmem:[#allocation74_spill] sm:$0xff] %v4372_v0  ;;  %v1743_v10 = vpack.c.bf16 %v4372_v0, %v4372_v0  ;;  %v1871_v0 = vunpack.c.l.b16 %v1742_v8 }
 0x3f7   : > { %v1872_v19 = vunpack.c.l.b16 %v1743_v10  ;;  %v3044_v10 = vld [vmem:[#allocation7 + $0x8] sm:$0xff] }
 0x3f8   : > { %2094 = vmatpush.bf16.msrb.mxu1 %v3044_v10  ;;  %v1732_v10 = vpack.c.bf16 %v4345_v47, %v4345_v47 }
 0x3f9   : > { %v1881_v33 = vpack.c.b16 %v1872_v19, %v1871_v0  ;;  %v4859_v19 = vld [vmem:[#allocation42_spill] sm:$0xff] }
 0x3fc   : > { %v4375_v53 = vpop.f32.mrf.mxu2 }
 0x3fd   : > { %4857 = vst [vmem:[#allocation75_spill] sm:$0xff] %v4375_v53  ;;  %v1744_v55 = vpack.c.bf16 %v4375_v53, %v4375_v53  ;;  %v1741_v53 = vpack.c.bf16 %v4367_v11, %v4367_v11 }
 0x3ff   : > { %v1873_v60 = vunpack.c.l.b16 %v1744_v55  ;;  %v1738_v55 = vpack.c.bf16 %v4360_v54, %v4360_v54 }
 0x401   : > { %v1867_v8 = vunpack.c.l.b16 %v1738_v55 }
 0x404   : > { %v4379_v59 = vpop.f32.mrf.mxu2  ;;  %1832 = vmatmul.bf16.gmra.mxu3 %v3944_v15  ;;  %v1740_v15 = vpack.c.bf16 %v4365_v26, %v4365_v26 }
 0x405   : > { %4858 = vst [vmem:[#allocation76_spill] sm:$0xff] %v4379_v59  ;;  %v1745_v45 = vpack.c.bf16 %v4379_v59, %v4379_v59  ;;  %v1870_v59 = vunpack.c.l.b16 %v1741_v53  ;;  %v3043_v53 = vld [vmem:[#allocation7] sm:$0xff] }
 0x406   : > { %2095 = vmatpush.bf16.msrb.mxu1 %v3043_v53  ;;  %v1730_v53 = vpack.c.bf16 %v4327_v22, %v4327_v22 }
 0x407   : > { %v1874_v14 = vunpack.c.l.b16 %v1745_v45  ;;  %v1869_v45 = vunpack.c.l.b16 %v1740_v15  ;;  %v1734_v15 = vpack.c.bf16 %v4350_v39, %v4350_v39 }
 0x408   : > { %v1859_v11 = vunpack.c.l.b16 %v1730_v53 }
 0x409   : > { %v1882_v25 = vpack.c.b16 %v1874_v14, %v1873_v60  ;;  %v1737_v60 = vpack.c.bf16 %v4357_v4, %v4357_v4  ;;  %v1868_v14 = vunpack.c.l.b16 %v1739_v58  ;;  %v1880_v62 = vpack.c.b16 %v1870_v59, %v1869_v45 }
 0x40a   : > { %v1733_v59 = vpack.c.bf16 %v4347_v40, %v4347_v40  ;;  %v1864_v45 = vunpack.c.l.b16 %v1735_v44 }
 0x40b   : > { %1891 = vmatpush.bf16.msrb.mxu0 %v1882_v25  ;;  %v1736_v25 = vpack.c.bf16 %v4355_v63, %v4355_v63  ;;  %v1866_v0 = vunpack.c.l.b16 %v1737_v60  ;;  %v1731_v60 = vpack.c.bf16 %v4337_v52, %v4337_v52 }
 0x40d   : > { %v1865_v58 = vunpack.c.l.b16 %v1736_v25  ;;  %v1861_v25 = vunpack.c.l.b16 %v1732_v10 }
 0x40f   : > { %1892 = vmatpush.bf16.msrb.mxu0 %v1881_v33  ;;  %v1879_v33 = vpack.c.b16 %v1868_v14, %v1867_v8  ;;  %v1878_v55 = vpack.c.b16 %v1866_v0, %v1865_v58  ;;  %v1862_v14 = vunpack.c.l.b16 %v1733_v59 }
 0x413   : > { %1893 = vmatpush.bf16.msrb.mxu0 %v1880_v62  ;;  %v1863_v62 = vunpack.c.l.b16 %v1734_v15 }
 0x414   : > { %1837 = vmatmul.bf16.gmra.mxu3 %v4859_v19  ;;  %v1860_v19 = vunpack.c.l.b16 %v1731_v60 }
 0x415   : > { %v1877_v8 = vpack.c.b16 %v1864_v45, %v1863_v62 }
 0x416   : > { %v1875_v44 = vpack.c.b16 %v1860_v19, %v1859_v11 }
 0x417   : > { %1894 = vmatpush.bf16.msrb.mxu0 %v1879_v33  ;;  %v1876_v33 = vpack.c.b16 %v1862_v14, %v1861_v25 }
 0x41b   : > { %1895 = vmatpush.bf16.msrb.mxu0 %v1878_v55 }
 0x41f   : > { %1896 = vmatpush.bf16.msrb.mxu0 %v1877_v8 }
 0x423   : > { %1897 = vmatpush.bf16.msrb.mxu0 %v1876_v33 }
 0x427   : > { %v1803_v0 = vpop.f32.mrf.mxu3  ;;  %1898 = vmatpush.bf16.msrb.mxu0 %v1875_v44 }
 0x428   : > { %v1804_v15 = vadd.f32 %v1803_v0, %v4163_v29 }
 0x42a   : > { %1899 = vmatmul.bf16.vlgmr.msrb.gmra.mxu0 %v3990_v27  ;;  %v1940_v59 = vmul.f32 %v1804_v15, %v3992_v24 }
 0x42c   : > { %v1972_v10 = vadd.f32 %v1940_v59, %v4002_v18 }
 0x42f   : > { %v1805_v58 = vpop.f32.mrf.mxu3 }
 0x430   : > { %v1806_v45 = vadd.f32 %v1805_v58, %v4168_v2 }
 0x432   : > { %v1941_v55 = vmul.f32 %v1806_v45, %v3998_v50 }
 0x434   : > { %v1973_v62 = vadd.f32 %v1941_v55, %v4005_v21 }
 0x436   : > { %v2004_v60 = vpack.c.bf16 %v1973_v62, %v1972_v10 }
 0x437   : > { %v1808_v14 = vpop.f32.mrf.mxu3 }
 0x438   : > { %2096 = vmatmul.bf16.vlgmr.msrb.gmra.mxu1 %v2004_v60  ;;  %v1809_v27 = vadd.f32 %v1808_v14, %v4183_v5  ;;  %v4860_v14 = vld [vmem:[#allocation43_spill] sm:$0xff] }
 0x43a   : > { %1904 = vmatmul.bf16.gmra.mxu0 %v4010_v13  ;;  %v1942_v29 = vmul.f32 %v1809_v27, %v4012_v43 }
 0x43c   : > { %v1974_v53 = vadd.f32 %v1942_v29, %v4022_v56  ;;  %v4862_v29 = vld [vmem:[#allocation63_spill] sm:$0xff] }
 0x43f   : > { %v1810_v11 = vpop.f32.mrf.mxu3 }
 0x440   : > { %v1811_v8 = vadd.f32 %v1810_v11, %v4188_v32 }
 0x442   : > { %v1943_v2 = vmul.f32 %v1811_v8, %v4018_v51 }
 0x444   : > { %v1975_v18 = vadd.f32 %v1943_v2, %v4025_v7  ;;  %v4863_v2 = vld [vmem:[#allocation45_spill] sm:$0xff] }
 0x446   : > { %v2005_v25 = vpack.c.bf16 %v1975_v18, %v1974_v53  ;;  %v4864_v53 = vld [vmem:[#allocation46_spill] sm:$0xff] }
 0x447   : > { %v1813_v21 = vpop.f32.mrf.mxu3 }
 0x448   : > { %2101 = vmatmul.bf16.gmra.mxu1 %v2005_v25  ;;  %v1814_v13 = vadd.f32 %v1813_v21, %v4203_v49  ;;  %v4865_v25 = vld [vmem:[#allocation47_spill] sm:$0xff] }
 0x44a   : > { %1909 = vmatmul.bf16.gmra.mxu0 %v4030_v20  ;;  %v1944_v5 = vmul.f32 %v1814_v13, %v4032_v31  ;;  %v4866_v13 = vld [vmem:[#allocation48_spill] sm:$0xff] }
 0x44c   : > { %v1976_v44 = vadd.f32 %v1944_v5, %v4042_v12 }
 0x44f   : > { %v1815_v19 = vpop.f32.mrf.mxu3 }
 0x450   : > { %v1816_v33 = vadd.f32 %v1815_v19, %v4208_v3  ;;  %v4867_v19 = vld [vmem:[#allocation66_spill] sm:$0xff] }
 0x452   : > { %v1945_v32 = vmul.f32 %v1816_v33, %v4038_v9 }
 0x454   : > { %v1977_v56 = vadd.f32 %v1945_v32, %v4045_v28 }
 0x456   : > { %v2006_v0 = vpack.c.bf16 %v1977_v56, %v1976_v44  ;;  %v4869_v44 = vld [vmem:[#allocation67_spill] sm:$0xff] }
 0x457   : > { %v1818_v7 = vpop.f32.mrf.mxu3 }
 0x458   : > { %2106 = vmatmul.bf16.gmra.mxu1 %v2006_v0  ;;  %v1819_v20 = vadd.f32 %v1818_v7, %v4223_v38  ;;  %v4870_v0 = vld [vmem:[#allocation37_spill] sm:$0xff] }
 0x45a   : > { %1914 = vmatmul.bf16.gmra.mxu0 %v4050_v30  ;;  %v1946_v49 = vmul.f32 %v1819_v20, %v4054_v61  ;;  %v4871_v20 = vld [vmem:[#allocation19_spill] sm:$0xff] }
 0x45c   : > { %v1978_v59 = vadd.f32 %v1946_v49, %v4062_v34  ;;  %v4872_v49 = vld [vmem:[#allocation20_spill] sm:$0xff] }
 0x45f   : > { %v1820_v15 = vpop.f32.mrf.mxu3 }
 0x460   : > { %v1821_v58 = vadd.f32 %v1820_v15, %v4228_v1 }
 0x462   : > { %v1947_v3 = vmul.f32 %v1821_v58, %v4058_v23 }
 0x464   : > { %v1979_v12 = vadd.f32 %v1947_v3, %v4065_v35 }
 0x466   : > { %v2007_v45 = vpack.c.bf16 %v1979_v12, %v1978_v59  ;;  %v4873_v12 = vld [vmem:[#allocation50_spill] sm:$0xff] }
 0x467   : > { %v1823_v28 = vpop.f32.mrf.mxu3 }
 0x468   : > { %2111 = vmatmul.bf16.gmra.mxu1 %v2007_v45  ;;  %v1824_v30 = vadd.f32 %v1823_v28, %v4243_v17  ;;  %v4861_v17 = vld [vmem:[#allocation44_spill] sm:$0xff]  ;;  %v4874_v45 = vld [vmem:[#allocation70_spill] sm:$0xff] }
 0x46a   : > { %1919 = vmatmul.bf16.gmra.mxu0 %v4070_v16  ;;  %v1948_v38 = vmul.f32 %v1824_v30, %v4074_v36 }
 0x46c   : > { %v1980_v62 = vadd.f32 %v1948_v38, %v4082_v41 }
 0x46f   : > { %v1825_v55 = vpop.f32.mrf.mxu3 }
 0x470   : > { %v1826_v10 = vadd.f32 %v1825_v55, %v4248_v42  ;;  %v4875_v55 = vld [vmem:[#allocation40_spill] sm:$0xff] }
 0x472   : > { %v1949_v1 = vmul.f32 %v1826_v10, %v4078_v37  ;;  %v4876_v10 = vld [vmem:[#allocation71_spill] sm:$0xff] }
 0x474   : > { %v1981_v34 = vadd.f32 %v1949_v1, %v4085_v6 }
 0x476   : > { %v2008_v60 = vpack.c.bf16 %v1981_v34, %v1980_v62  ;;  %v4877_v62 = vld [vmem:[#allocation41_spill] sm:$0xff] }
 0x477   : > { %v1828_v35 = vpop.f32.mrf.mxu3 }
 0x478   : > { %2116 = vmatmul.bf16.gmra.mxu1 %v2008_v60  ;;  %v1829_v16 = vadd.f32 %v1828_v35, %v4263_v57  ;;  %v4868_v57 = vld [vmem:[#allocation49_spill] sm:$0xff] }
 0x479   : > { %v4878_v60 = vld [vmem:[#allocation21_spill] sm:$0xff] }
 0x47a   : > { %1924 = vmatmul.bf16.gmra.mxu0 %v4860_v14  ;;  %v1950_v11 = vmul.f32 %v1829_v16, %v4861_v17  ;;  %v4879_v14 = vld [vmem:[#allocation22_spill] sm:$0xff] }
 0x47c   : > { %v1982_v18 = vadd.f32 %v1950_v11, %v4864_v53 }
 0x47f   : > { %v1830_v27 = vpop.f32.mrf.mxu3 }
 0x480   : > { %v1831_v8 = vadd.f32 %v1830_v27, %v4862_v29 }
 0x482   : > { %v1951_v42 = vmul.f32 %v1831_v8, %v4863_v2 }
 0x484   : > { %v1983_v41 = vadd.f32 %v1951_v42, %v4865_v25  ;;  %v4880_v42 = vld [vmem:[#allocation51_spill] sm:$0xff]  ;;  %v4881_v25 = vld [vmem:[#allocation52_spill] sm:$0xff] }
 0x486   : > { %v2009_v21 = vpack.c.bf16 %v1983_v41, %v1982_v18 }
 0x487   : > { %v1833_v6 = vpop.f32.mrf.mxu3 }
 0x488   : > { %2121 = vmatmul.bf16.gmra.mxu1 %v2009_v21  ;;  %v1834_v5 = vadd.f32 %v1833_v6, %v4867_v19  ;;  %v4476_v21 = vld [vmem:[%s4632_s7] ss:$0 sm:$0xff]  ;;  %v4882_v6 = vld [vmem:[#allocation23_spill] sm:$0xff]  ;;  %v4883_v19 = vld [vmem:[#allocation24_spill] sm:$0xff] }
 0x48a   : > { %1929 = vmatmul.bf16.gmra.mxu0 %v4866_v13  ;;  %v1952_v32 = vmul.f32 %v1834_v5, %v4868_v57 }
 0x48c   : > { %v1984_v15 = vadd.f32 %v1952_v32, %v4871_v20 }
 0x48f   : > { %v1835_v33 = vpop.f32.mrf.mxu3 }
 0x490   : > { %v1836_v56 = vadd.f32 %v1835_v33, %v4869_v44 }
 0x492   : > { %v1953_v7 = vmul.f32 %v1836_v56, %v4870_v0 }
 0x494   : > { %v1985_v58 = vadd.f32 %v1953_v7, %v4872_v49 }
 0x496   : > { %v2010_v3 = vpack.c.bf16 %v1985_v58, %v1984_v15  ;;  %v4884_v58 = vld [vmem:[#allocation53_spill] sm:$0xff] }
 0x497   : > { %v1838_v59 = vpop.f32.mrf.mxu3 }
 0x498   : > { %2126 = vmatmul.bf16.gmra.mxu1 %v2010_v3  ;;  %v1839_v28 = vadd.f32 %v1838_v59, %v4874_v45 }
 0x49a   : > { %1934 = vmatmul.bf16.gmra.mxu0 %v4873_v12  ;;  %v1954_v38 = vmul.f32 %v1839_v28, %v4875_v55  ;;  %v4885_v28 = vld [vmem:[#allocation54_spill] sm:$0xff] }
 0x49c   : > { %v1986_v35 = vadd.f32 %v1954_v38, %v4878_v60 }
 0x49f   : > { %v1840_v30 = vpop.f32.mrf.mxu3 }
 0x4a0   : > { %v1841_v1 = vadd.f32 %v1840_v30, %v4876_v10 }
 0x4a2   : > { %v1955_v34 = vmul.f32 %v1841_v1, %v4877_v62  ;;  %v4886_v1 = vld [vmem:[#allocation25_spill] sm:$0xff] }
 0x4a4   : > { %v1987_v16 = vadd.f32 %v1955_v34, %v4879_v14  ;;  %v4887_v34 = vld [vmem:[#allocation26_spill] sm:$0xff] }
 0x4a6   : > { %v2011_v27 = vpack.c.bf16 %v1987_v16, %v1986_v35 }
 0x4a7   : > { %v1900_v11 = vpop.f32.mrf.mxu0 }
 0x4a8   : > { %2131 = vmatmul.bf16.gmra.mxu1 %v2011_v27  ;;  %v1901_v29 = vadd.f32 %v1900_v11, %v4327_v22 }
 0x4aa   : > { %v1956_v53 = vmul.f32 %v1901_v29, %v4880_v42 }
 0x4ac   : > { %v1988_v13 = vadd.f32 %v1956_v53, %v4882_v6  ;;  %v4888_v6 = vld [vmem:[#allocation55_spill] sm:$0xff] }
 0x4af   : > { %v1902_v8 = vpop.f32.mrf.mxu0 }
 0x4b0   : > { %v1903_v18 = vadd.f32 %v1902_v8, %v4337_v52 }
 0x4b2   : > { %v1957_v41 = vmul.f32 %v1903_v18, %v4881_v25 }
 0x4b4   : > { %v1989_v5 = vadd.f32 %v1957_v41, %v4883_v19 }
 0x4b5   : > { %v2097_v33 = vpop.f32.mrf.mxu1 }
 0x4b6   : > { %v2012_v32 = vpack.c.bf16 %v1989_v5, %v1988_v13  ;;  %v2098_v22 = vadd.f32 %v4476_v21, %v2097_v33 }
 0x4b7   : > { %v1905_v44 = vpop.f32.mrf.mxu0 }
 0x4b8   : > { %2136 = vmatmul.bf16.gmra.mxu1 %v2012_v32  ;;  %v2209_v56 = vmul.f32 0.01, %v2098_v22  ;;  %vm2177_vm1 = vcmp.ge.f32.partialorder %v2098_v22, 0.0  ;;  %v1906_v52 = vadd.f32 %v1905_v44, %v4345_v47  ;;  %v4889_v32 = vld [vmem:[#allocation56_spill] sm:$0xff] }
 0x4ba   : > { %v2241_v15 = vsel %vm2177_vm1, %v2098_v22, %v2209_v56  ;;  %v1958_v3 = vmul.f32 %v1906_v52, %v4884_v58  ;;  %v4890_v56 = vld [vmem:[#allocation27_spill] sm:$0xff]  ;;  %v4891_v52 = vld [vmem:[#allocation28_spill] sm:$0xff] }
 0x4bb   : > { %v2273_v38 = vmul.f32 %v2241_v15, %v3992_v24 }
 0x4bc   : > { %v1990_v47 = vadd.f32 %v1958_v3, %v4886_v1  ;;  %v4892_v1 = vld [vmem:[#allocation57_spill] sm:$0xff] }
 0x4bd   : > { %v2099_v7 = vpop.f32.mrf.mxu1 }
 0x4be   : > { %v2100_v20 = vadd.f32 %v4476_v21, %v2099_v7 }
 0x4bf   : > { %v1907_v49 = vpop.f32.mrf.mxu0 }
 0x4c0   : > { %vm2178_vm2 = vcmp.ge.f32.partialorder %v2100_v20, 0.0  ;;  %v2210_v59 = vmul.f32 0.01, %v2100_v20  ;;  %v1908_v12 = vadd.f32 %v1907_v49, %v4347_v40 }
 0x4c2   : > { %v2242_v45 = vsel %vm2178_vm2, %v2100_v20, %v2210_v59  ;;  %v1959_v30 = vmul.f32 %v1908_v12, %v4885_v28 }
 0x4c3   : > { %v2274_v10 = vmul.f32 %v2242_v45, %v3998_v50 }
 0x4c4   : > { %v1991_v60 = vadd.f32 %v1959_v30, %v4887_v34 }
 0x4c5   : > { %v2305_v35 = vadd.f32 %v2274_v10, %v2273_v38  ;;  %v2102_v14 = vpop.f32.mrf.mxu1 }
 0x4c6   : > { %v2103_v16 = vadd.f32 %v4476_v21, %v2102_v14  ;;  %v2013_v27 = vpack.c.bf16 %v1991_v60, %v1990_v47  ;;  %v4893_v14 = vld [vmem:[#allocation58_spill] sm:$0xff] }
 0x4c7   : > { %v1910_v11 = vpop.f32.mrf.mxu0 }
 0x4c8   : > { %vm2179_vm3 = vcmp.ge.f32.partialorder %v2103_v16, 0.0  ;;  %v2211_v29 = vmul.f32 0.01, %v2103_v16  ;;  %2141 = vmatmul.bf16.gmra.mxu1 %v2013_v27  ;;  %v1911_v24 = vadd.f32 %v1910_v11, %v4350_v39  ;;  %v4894_v11 = vld [vmem:[#allocation29_spill] sm:$0xff] }
 0x4ca   : > { %v2243_v40 = vsel %vm2179_vm3, %v2103_v16, %v2211_v29  ;;  %v1960_v13 = vmul.f32 %v1911_v24, %v4888_v6  ;;  %v4895_v29 = vld [vmem:[#allocation30_spill] sm:$0xff] }
 0x4cb   : > { %v2275_v8 = vmul.f32 %v2243_v40, %v4012_v43 }
 0x4cc   : > { %v1992_v43 = vadd.f32 %v1960_v13, %v4890_v56 }
 0x4cd   : > { %v2306_v53 = vadd.f32 %v2305_v35, %v2275_v8  ;;  %v2104_v50 = vpop.f32.mrf.mxu1 }
 0x4ce   : > { %v2105_v18 = vadd.f32 %v4476_v21, %v2104_v50 }
 0x4cf   : > { %v1912_v41 = vpop.f32.mrf.mxu0 }
 0x4d0   : > { %vm2180_vm4 = vcmp.ge.f32.partialorder %v2105_v18, 0.0  ;;  %v2212_v19 = vmul.f32 0.01, %v2105_v18  ;;  %v1913_v5 = vadd.f32 %v1912_v41, %v4352_v46 }
 0x4d2   : > { %v2244_v33 = vsel %vm2180_vm4, %v2105_v18, %v2212_v19  ;;  %v1961_v22 = vmul.f32 %v1913_v5, %v4889_v32 }
 0x4d3   : > { %v2276_v44 = vmul.f32 %v2244_v33, %v4018_v51 }
 0x4d4   : > { %v1993_v39 = vadd.f32 %v1961_v22, %v4891_v52  ;;  %v4896_v22 = vld [vmem:[#allocation59_spill] sm:$0xff] }
 0x4d5   : > { %v2307_v7 = vadd.f32 %v2306_v53, %v2276_v44  ;;  %v2107_v20 = vpop.f32.mrf.mxu1 }
 0x4d6   : > { %v2108_v15 = vadd.f32 %v4476_v21, %v2107_v20  ;;  %v2014_v49 = vpack.c.bf16 %v1993_v39, %v1992_v43  ;;  %v4897_v39 = vld [vmem:[#allocation60_spill] sm:$0xff] }
 0x4d7   : > { %v1915_v3 = vpop.f32.mrf.mxu0 }
 0x4d8   : > { %vm2181_vm5 = vcmp.ge.f32.partialorder %v2108_v15, 0.0  ;;  %v2213_v59 = vmul.f32 0.01, %v2108_v15  ;;  %2146 = vmatmul.bf16.gmra.mxu1 %v2014_v49  ;;  %v1916_v45 = vadd.f32 %v1915_v3, %v4355_v63  ;;  %v4899_v49 = vld [vmem:[#allocation32_spill] sm:$0xff] }
 0x4da   : > { %v2245_v12 = vsel %vm2181_vm5, %v2108_v15, %v2213_v59  ;;  %v1962_v47 = vmul.f32 %v1916_v45, %v4892_v1  ;;  %v4898_v15 = vld [vmem:[#allocation31_spill] sm:$0xff] }
 0x4db   : > { %v2277_v46 = vmul.f32 %v2245_v12, %v4032_v31 }
 0x4dc   : > { %v1994_v31 = vadd.f32 %v1962_v47, %v4894_v11 }
 0x4dd   : > { %v2308_v30 = vadd.f32 %v2307_v7, %v2277_v46  ;;  %v2109_v51 = vpop.f32.mrf.mxu1 }
 0x4de   : > { %v2110_v38 = vadd.f32 %v4476_v21, %v2109_v51 }
 0x4df   : > { %v1917_v10 = vpop.f32.mrf.mxu0 }
 0x4e0   : > { %vm2182_vm6 = vcmp.ge.f32.partialorder %v2110_v38, 0.0  ;;  %v2214_v34 = vmul.f32 0.01, %v2110_v38  ;;  %v1918_v60 = vadd.f32 %v1917_v10, %v4357_v4 }
 0x4e2   : > { %v2246_v35 = vsel %vm2182_vm6, %v2110_v38, %v2214_v34  ;;  %v1963_v16 = vmul.f32 %v1918_v60, %v4893_v14  ;;  %v4900_v60 = vld [vmem:[#allocation61_spill] sm:$0xff] }
 0x4e3   : > { %v2278_v27 = vmul.f32 %v2246_v35, %v4038_v9 }
 0x4e4   : > { %v1995_v63 = vadd.f32 %v1963_v16, %v4895_v29  ;;  %v4902_v29 = vld [vmem:[#allocation62_spill] sm:$0xff] }
 0x4e5   : > { %v2309_v40 = vadd.f32 %v2308_v30, %v2278_v27  ;;  %v2112_v8 = vpop.f32.mrf.mxu1  ;;  %v4901_v27 = vld [vmem:[#allocation72_spill] sm:$0xff] }
 0x4e6   : > { %v2113_v24 = vadd.f32 %v4476_v21, %v2112_v8  ;;  %v2015_v53 = vpack.c.bf16 %v1995_v63, %v1994_v31  ;;  %v4903_v8 = vld [vmem:[#allocation33_spill] sm:$0xff] }
 0x4e7   : > { %v1920_v50 = vpop.f32.mrf.mxu0 }
 0x4e8   : > { %vm2183_vm7 = vcmp.ge.f32.partialorder %v2113_v24, 0.0  ;;  %v2215_v18 = vmul.f32 0.01, %v2113_v24  ;;  %2151 = vmatmul.bf16.gmra.mxu1 %v2015_v53  ;;  %v1921_v13 = vadd.f32 %v1920_v50, %v4360_v54 }
 0x4ea   : > { %v2247_v41 = vsel %vm2183_vm7, %v2113_v24, %v2215_v18  ;;  %v1964_v44 = vmul.f32 %v1921_v13, %v4896_v22  ;;  %v4904_v24 = vld [vmem:[#allocation34_spill] sm:$0xff] }
 0x4eb   : > { %v2279_v4 = vmul.f32 %v2247_v41, %v4054_v61 }
 0x4ec   : > { %v1996_v61 = vadd.f32 %v1964_v44, %v4898_v15  ;;  %v4907_v15 = vld [vmem:[#allocation74_spill] sm:$0xff] }
 0x4ed   : > { %v2310_v19 = vadd.f32 %v2309_v40, %v2279_v4  ;;  %v2114_v9 = vpop.f32.mrf.mxu1 }
 0x4ee   : > { %v2115_v5 = vadd.f32 %v4476_v21, %v2114_v9 }
 0x4ef   : > { %v1922_v33 = vpop.f32.mrf.mxu0 }
 0x4f0   : > { %vm2184_vm8 = vcmp.ge.f32.partialorder %v2115_v5, 0.0  ;;  %v2216_v56 = vmul.f32 0.01, %v2115_v5  ;;  %v1923_v43 = vadd.f32 %v1922_v33, %v4362_v48 }
 0x4f2   : > { %v2248_v52 = vsel %vm2184_vm8, %v2115_v5, %v2216_v56  ;;  %v1965_v7 = vmul.f32 %v1923_v43, %v4897_v39  ;;  %v4905_v5 = vld [vmem:[#allocation73_spill] sm:$0xff] }
 0x4f3   : > { %v2280_v20 = vmul.f32 %v2248_v52, %v4058_v23  ;;  %v4906_v52 = vld [vmem:[#allocation64_spill] sm:$0xff] }
 0x4f4   : > { %v1997_v54 = vadd.f32 %v1965_v7, %v4899_v49 }
 0x4f5   : > { %v2311_v3 = vadd.f32 %v2310_v19, %v2280_v20  ;;  %v2117_v59 = vpop.f32.mrf.mxu1 }
 0x4f6   : > { %v2118_v12 = vadd.f32 %v4476_v21, %v2117_v59  ;;  %v2016_v46 = vpack.c.bf16 %v1997_v54, %v1996_v61  ;;  %v4908_v54 = vld [vmem:[#allocation65_spill] sm:$0xff] }
 0x4f7   : > { %v1925_v45 = vpop.f32.mrf.mxu0 }
 0x4f8   : > { %vm2185_vm9 = vcmp.ge.f32.partialorder %v2118_v12, 0.0  ;;  %v2217_v30 = vmul.f32 0.01, %v2118_v12  ;;  %2156 = vmatmul.bf16.gmra.mxu1 %v2016_v46  ;;  %v1926_v38 = vadd.f32 %v1925_v45, %v4365_v26  ;;  %v4910_v46 = vld [vmem:[#allocation36_spill] sm:$0xff] }
 0x4fa   : > { %v2249_v51 = vsel %vm2185_vm9, %v2118_v12, %v2217_v30  ;;  %v1966_v35 = vmul.f32 %v1926_v38, %v4900_v60  ;;  %v4909_v12 = vld [vmem:[#allocation35_spill] sm:$0xff] }
 0x4fb   : > { %v2281_v48 = vmul.f32 %v2249_v51, %v4074_v36 }
 0x4fc   : > { %v1998_v36 = vadd.f32 %v1966_v35, %v4903_v8  ;;  %v4911_v35 = vld [vmem:[#allocation75_spill] sm:$0xff] }
 0x4fd   : > { %v2312_v10 = vadd.f32 %v2311_v3, %v2281_v48  ;;  %v2119_v23 = vpop.f32.mrf.mxu1 }
 0x4fe   : > { %v2120_v47 = vadd.f32 %v4476_v21, %v2119_v23 }
 0x4ff   : > { %v1927_v34 = vpop.f32.mrf.mxu0 }
 0x500   : > { %vm2186_vm10 = vcmp.ge.f32.partialorder %v2120_v47, 0.0  ;;  %v2218_v16 = vmul.f32 0.01, %v2120_v47  ;;  %v1928_v11 = vadd.f32 %v1927_v34, %v4901_v27 }
 0x502   : > { %v2250_v31 = vsel %vm2186_vm10, %v2120_v47, %v2218_v16  ;;  %v1967_v63 = vmul.f32 %v1928_v11, %v4902_v29 }
 0x503   : > { %v2282_v40 = vmul.f32 %v2250_v31, %v4078_v37 }
 0x504   : > { %v1999_v26 = vadd.f32 %v1967_v63, %v4904_v24  ;;  %v4912_v63 = vld [vmem:[#allocation68_spill] sm:$0xff] }
 0x505   : > { %v2313_v53 = vadd.f32 %v2312_v10, %v2282_v40  ;;  %v2122_v50 = vpop.f32.mrf.mxu1 }
 0x506   : > { %v2123_v18 = vadd.f32 %v4476_v21, %v2122_v50  ;;  %v2017_v41 = vpack.c.bf16 %v1999_v26, %v1998_v36  ;;  %v4913_v36 = vld [vmem:[#allocation76_spill] sm:$0xff] }
 0x507   : > { %v1930_v4 = vpop.f32.mrf.mxu0 }
 0x508   : > { %vm2187_vm11 = vcmp.ge.f32.partialorder %v2123_v18, 0.0  ;;  %v2219_v13 = vmul.f32 0.01, %v2123_v18  ;;  %2161 = vmatmul.bf16.gmra.mxu1 %v2017_v41  ;;  %v1931_v33 = vadd.f32 %v1930_v4, %v4905_v5  ;;  %v4915_v41 = vld [vmem:[#allocation38_spill] sm:$0xff]  ;;  %v4916_v4 = vld [vmem:[#allocation39_spill] sm:$0xff] }
 0x50a   : > { %v2251_v19 = vsel %vm2187_vm11, %v2123_v18, %v2219_v13  ;;  %v1968_v7 = vmul.f32 %v1931_v33, %v4906_v52 }
 0x50b   : > { %v2283_v9 = vmul.f32 %v2251_v19, %v4861_v17 }
 0x50c   : > { %v2000_v17 = vadd.f32 %v1968_v7, %v4909_v12 }
 0x50d   : > { %v2314_v44 = vadd.f32 %v2313_v53, %v2283_v9  ;;  %v2124_v37 = vpop.f32.mrf.mxu1  ;;  %v4914_v53 = vld [vmem:[#allocation69_spill] sm:$0xff] }
 0x50e   : > { %v2125_v56 = vadd.f32 %v4476_v21, %v2124_v37 }
 0x50f   : > { %v1932_v43 = vpop.f32.mrf.mxu0 }
 0x510   : > { %vm2188_vm12 = vcmp.ge.f32.partialorder %v2125_v56, 0.0  ;;  %v2220_v20 = vmul.f32 0.01, %v2125_v56  ;;  %v1933_v61 = vadd.f32 %v1932_v43, %v4907_v15 }
 0x512   : > { %v2252_v49 = vsel %vm2188_vm12, %v2125_v56, %v2220_v20  ;;  %v1969_v3 = vmul.f32 %v1933_v61, %v4908_v54 }
 0x513   : > { %v2284_v59 = vmul.f32 %v2252_v49, %v4863_v2 }
 0x514   : > { %v2001_v45 = vadd.f32 %v1969_v3, %v4910_v46 }
 0x515   : > { %v2315_v30 = vadd.f32 %v2314_v44, %v2284_v59  ;;  %v2127_v51 = vpop.f32.mrf.mxu1 }
 0x516   : > { %v2128_v48 = vadd.f32 %v4476_v21, %v2127_v51  ;;  %v2018_v38 = vpack.c.bf16 %v2001_v45, %v2000_v17 }
 0x517   : > { %v1935_v10 = vpop.f32.mrf.mxu0 }
 0x518   : > { %vm2189_vm13 = vcmp.ge.f32.partialorder %v2128_v48, 0.0  ;;  %v2221_v23 = vmul.f32 0.01, %v2128_v48  ;;  %2166 = vmatmul.bf16.gmra.mxu1 %v2018_v38  ;;  %v1936_v16 = vadd.f32 %v1935_v10, %v4911_v35 }
 0x51a   : > { %v2253_v47 = vsel %vm2189_vm13, %v2128_v48, %v2221_v23  ;;  %v1970_v40 = vmul.f32 %v1936_v16, %v4912_v63 }
 0x51b   : > { %v2285_v34 = vmul.f32 %v2253_v47, %v4868_v57 }
 0x51c   : > { %v2002_v57 = vadd.f32 %v1970_v40, %v4915_v41 }
 0x51d   : > { %v2316_v27 = vadd.f32 %v2315_v30, %v2285_v34  ;;  %v2129_v2 = vpop.f32.mrf.mxu1 }
 0x51e   : > { %v2130_v11 = vadd.f32 %v4476_v21, %v2129_v2 }
 0x51f   : > { %v1937_v31 = vpop.f32.mrf.mxu0 }
 0x520   : > { %vm2190_vm14 = vcmp.ge.f32.partialorder %v2130_v11, 0.0  ;;  %v2222_v8 = vmul.f32 0.01, %v2130_v11  ;;  %v1938_v24 = vadd.f32 %v1937_v31, %v4913_v36 }
 0x522   : > { %v2254_v26 = vsel %vm2190_vm14, %v2130_v11, %v2222_v8  ;;  %v1971_v50 = vmul.f32 %v1938_v24, %v4914_v53 }
 0x523   : > { %v2286_v18 = vmul.f32 %v2254_v26, %v4870_v0 }
 0x524   : > { %v2003_v13 = vadd.f32 %v1971_v50, %v4916_v4 }
 0x525   : > { %v2317_v19 = vadd.f32 %v2316_v27, %v2286_v18  ;;  %v2132_v9 = vpop.f32.mrf.mxu1 }
 0x526   : > { %v2133_v5 = vadd.f32 %v4476_v21, %v2132_v9  ;;  %v2019_v33 = vpack.c.bf16 %v2003_v13, %v2002_v57  ;;  %v3058_v13 = vld [vmem:[#allocation8 + $0x38] sm:$0xff] }
 0x527   : > { %2516 = vmatpush.bf16.msrb.mxu3 %v3058_v13 }
 0x528   : > { %vm2191_vm15 = vcmp.ge.f32.partialorder %v2133_v5, 0.0  ;;  %v2223_v44 = vmul.f32 0.01, %v2133_v5  ;;  %2171 = vmatmul.bf16.gmra.mxu1 %v2019_v33 }
 0x52a   : > { %v2255_v37 = vsel %vm2191_vm15, %v2133_v5, %v2223_v44  ;;  %v3056_v5 = vld [vmem:[#allocation8 + $0x28] sm:$0xff] }
 0x52b   : > { %v2287_v56 = vmul.f32 %v2255_v37, %v4875_v55 }
 0x52d   : > { %v2318_v43 = vadd.f32 %v2317_v19, %v2287_v56  ;;  %v2134_v7 = vpop.f32.mrf.mxu1  ;;  %v3055_v56 = vld [vmem:[#allocation8 + $0x20] sm:$0xff] }
 0x52e   : > { %v2135_v20 = vadd.f32 %v4476_v21, %v2134_v7 }
 0x530   : > { %vm2192_vm0 = vcmp.ge.f32.partialorder %v2135_v20, 0.0  ;;  %v2224_v0 = vmul.f32 0.01, %v2135_v20 }
 0x532   : > { %v2256_v15 = vsel %vm2192_vm0, %v2135_v20, %v2224_v0 }
 0x533   : > { %v2288_v61 = vmul.f32 %v2256_v15, %v4877_v62 }
 0x535   : > { %v4554_v49 = vadd.f32 %v2318_v43, %v2288_v61  ;;  %v2137_v3 = vpop.f32.mrf.mxu1  ;;  %v3054_v61 = vld [vmem:[#allocation8 + $0x18] sm:$0xff] }
 0x536   : > { %v2138_v59 = vadd.f32 %v4476_v21, %v2137_v3 }
 0x538   : > { %v2225_v12 = vmul.f32 0.01, %v2138_v59  ;;  %vm2193_vm1 = vcmp.ge.f32.partialorder %v2138_v59, 0.0 }
 0x53a   : > { %v2257_v55 = vsel %vm2193_vm1, %v2138_v59, %v2225_v12  ;;  %vm2464_vm1 = vcmask 1041409  }
 0x53b   : > { %v2289_v51 = vmul.f32 %v2257_v55, %v4880_v42 }
 0x53d   : > { %v2139_v17 = vpop.f32.mrf.mxu1 }
 0x53e   : > { %v2140_v46 = vadd.f32 %v4476_v21, %v2139_v17 }
 0x540   : > { %vm2194_vm2 = vcmp.ge.f32.partialorder %v2140_v46, 0.0  ;;  %v2226_v45 = vmul.f32 0.01, %v2140_v46 }
 0x542   : > { %v2258_v30 = vsel %vm2194_vm2, %v2140_v46, %v2226_v45 }
 0x543   : > { %v2290_v48 = vmul.f32 %v2258_v30, %v4881_v25 }
 0x545   : > { %v2326_v38 = vadd.f32 %v2290_v48, %v2289_v51  ;;  %v2142_v62 = vpop.f32.mrf.mxu1  ;;  %v3053_v48 = vld [vmem:[#allocation8 + $0x10] sm:$0xff] }
 0x546   : > { %v2143_v10 = vadd.f32 %v4476_v21, %v2142_v62 }
 0x548   : > { %vm2195_vm3 = vcmp.ge.f32.partialorder %v2143_v10, 0.0  ;;  %v2227_v23 = vmul.f32 0.01, %v2143_v10 }
 0x54a   : > { %v2259_v47 = vsel %vm2195_vm3, %v2143_v10, %v2227_v23 }
 0x54b   : > { %v2291_v34 = vmul.f32 %v2259_v47, %v4884_v58 }
 0x54d   : > { %v2327_v35 = vadd.f32 %v2326_v38, %v2291_v34  ;;  %v2144_v16 = vpop.f32.mrf.mxu1 }
 0x54e   : > { %v2145_v27 = vadd.f32 %v4476_v21, %v2144_v16 }
 0x550   : > { %vm2196_vm4 = vcmp.ge.f32.partialorder %v2145_v27, 0.0  ;;  %v2228_v2 = vmul.f32 0.01, %v2145_v27 }
 0x552   : > { %v2260_v11 = vsel %vm2196_vm4, %v2145_v27, %v2228_v2 }
 0x553   : > { %v2292_v42 = vmul.f32 %v2260_v11, %v4885_v28  ;;  %v3057_v28 = vld [vmem:[#allocation8 + $0x30] sm:$0xff] }
 0x554   : > { %2517 = vmatpush.bf16.msrb.mxu3 %v3057_v28 }
 0x555   : > { %v2328_v31 = vadd.f32 %v2327_v35, %v2292_v42  ;;  %v2147_v25 = vpop.f32.mrf.mxu1 }
 0x556   : > { %v2148_v40 = vadd.f32 %v4476_v21, %v2147_v25 }
 0x558   : > { %vm2197_vm5 = vcmp.ge.f32.partialorder %v2148_v40, 0.0  ;;  %v2229_v8 = vmul.f32 0.01, %v2148_v40  ;;  %2518 = vmatpush.bf16.msrb.mxu3 %v3056_v5 }
 0x55a   : > { %v2261_v36 = vsel %vm2197_vm5, %v2148_v40, %v2229_v8 }
 0x55b   : > { %v2293_v24 = vmul.f32 %v2261_v36, %v4888_v6 }
 0x55c   : > { %2519 = vmatpush.bf16.msrb.mxu3 %v3055_v56 }
 0x55d   : > { %v2329_v26 = vadd.f32 %v2328_v31, %v2293_v24  ;;  %v2149_v58 = vpop.f32.mrf.mxu1  ;;  %v2320_v24 = vrot.slane %v4554_v49, 4 }
 0x55e   : > { %v2150_v9 = vadd.f32 %v4476_v21, %v2149_v58 }
 0x560   : > { %v2230_v6 = vmul.f32 0.01, %v2150_v9  ;;  %vm2198_vm6 = vcmp.ge.f32.partialorder %v2150_v9, 0.0  ;;  %2520 = vmatpush.bf16.msrb.mxu3 %v3054_v61 }
 0x562   : > { %v2262_v20 = vsel %vm2198_vm6, %v2150_v9, %v2230_v6 }
 0x563   : > { %v2294_v17 = vmul.f32 %v2262_v20, %v4889_v32 }
 0x564   : > { %2521 = vmatpush.bf16.msrb.mxu3 %v3053_v48 }
 0x565   : > { %v2152_v50 = vpop.f32.mrf.mxu1  ;;  %v2330_v23 = vadd.f32 %v2329_v26, %v2294_v17  ;;  %v2434_v17 = vpop.permute.xlu0 %2433 }
 0x566   : > { %v2153_v33 = vadd.f32 %v4476_v21, %v2152_v50 }
 0x568   : > { %v2231_v43 = vmul.f32 0.01, %v2153_v33  ;;  %vm2199_vm7 = vcmp.ge.f32.partialorder %v2153_v33, 0.0 }
 0x56a   : > { %v2263_v3 = vsel %vm2199_vm7, %v2153_v33, %v2231_v43 }
 0x56b   : > { %v2295_v51 = vmul.f32 %v2263_v3, %v4892_v1  ;;  %v3052_v1 = vld [vmem:[#allocation8 + $0x8] sm:$0xff]  ;;  %v2429_v3 = vpop.permute.xlu2 %2428 }
 0x56c   : > { %2522 = vmatpush.bf16.msrb.mxu3 %v3052_v1 }
 0x56d   : > { %v2154_v18 = vpop.f32.mrf.mxu1  ;;  %v2331_v16 = vadd.f32 %v2330_v23, %v2295_v51 }
 0x56e   : > { %v2155_v37 = vadd.f32 %v4476_v21, %v2154_v18 }
 0x570   : > { %v2232_v0 = vmul.f32 0.01, %v2155_v37  ;;  %vm2200_vm8 = vcmp.ge.f32.partialorder %v2155_v37, 0.0 }
 0x572   : > { %v2264_v55 = vsel %vm2200_vm8, %v2155_v37, %v2232_v0 }
 0x573   : > { %v2296_v47 = vmul.f32 %v2264_v55, %v4893_v14  ;;  %v3051_v14 = vld [vmem:[#allocation8] sm:$0xff] }
 0x574   : > { %2523 = vmatpush.bf16.msrb.mxu3 %v3051_v14 }
 0x575   : > { %v2157_v41 = vpop.f32.mrf.mxu1  ;;  %v2332_v42 = vadd.f32 %v2331_v16, %v2296_v47 }
 0x576   : > { %v2158_v7 = vadd.f32 %v4476_v21, %v2157_v41 }
 0x578   : > { %v2233_v59 = vmul.f32 0.01, %v2158_v7  ;;  %vm2201_vm9 = vcmp.ge.f32.partialorder %v2158_v7, 0.0 }
 0x57a   : > { %v2265_v38 = vsel %vm2201_vm9, %v2158_v7, %v2233_v59 }
 0x57b   : > { %v2297_v27 = vmul.f32 %v2265_v38, %v4896_v22  ;;  %v3155_v38 = vld [vmem:[%s4634_s9] ss:$0 sm:$0xff] }
 0x57d   : > { %v2159_v57 = vpop.f32.mrf.mxu1  ;;  %v2333_v26 = vadd.f32 %v2332_v42, %v2297_v27 }
 0x57e   : > { %v2160_v15 = vadd.f32 %v4476_v21, %v2159_v57  ;;  %v2321_v57 = vadd.f32 %v2320_v24, %v4554_v49 }
 0x580   : > { %v2234_v45 = vmul.f32 0.01, %v2160_v15  ;;  %vm2202_vm10 = vcmp.ge.f32.partialorder %v2160_v15, 0.0  ;;  %v2322_v33 = vrot.slane %v2321_v57, 2 }
 0x582   : > { %v2266_v32 = vsel %vm2202_vm10, %v2160_v15, %v2234_v45  ;;  %v2323_v43 = vadd.f32 %v2322_v33, %v2321_v57 }
 0x583   : > { %v2298_v31 = vmul.f32 %v2266_v32, %v4897_v39 }
 0x584   : > { %v2324_v20 = vrot.slane %v2323_v43, 1 }
 0x585   : > { %v2162_v4 = vpop.f32.mrf.mxu1  ;;  %v2334_v18 = vadd.f32 %v2333_v26, %v2298_v31 }
 0x586   : > { %v2163_v12 = vadd.f32 %v4476_v21, %v2162_v4 }
 0x588   : > { %v2235_v62 = vmul.f32 0.01, %v2163_v12  ;;  %vm2203_vm11 = vcmp.ge.f32.partialorder %v2163_v12, 0.0 }
 0x58a   : > { %v2267_v2 = vsel %vm2203_vm11, %v2163_v12, %v2235_v62 }
 0x58b   : > { %v2299_v22 = vmul.f32 %v2267_v2, %v4900_v60 }
 0x58d   : > { %v2164_v19 = vpop.f32.mrf.mxu1  ;;  %v2335_v4 = vadd.f32 %v2334_v18, %v2299_v22 }
 0x58e   : > { %v2165_v30 = vadd.f32 %v4476_v21, %v2164_v19 }
 0x590   : > { %v2236_v34 = vmul.f32 0.01, %v2165_v30  ;;  %vm2204_vm12 = vcmp.ge.f32.partialorder %v2165_v30, 0.0 }
 0x592   : > { %v2268_v40 = vsel %vm2204_vm12, %v2165_v30, %v2236_v34 }
 0x593   : > { %v2300_v41 = vmul.f32 %v2268_v40, %v4902_v29 }
 0x595   : > { %v2167_v44 = vpop.f32.mrf.mxu1  ;;  %v2336_v28 = vadd.f32 %v2335_v4, %v2300_v41 }
 0x596   : > { %v2168_v10 = vadd.f32 %v4476_v21, %v2167_v44 }
 0x598   : > { %v2237_v11 = vmul.f32 0.01, %v2168_v10  ;;  %vm2205_vm13 = vcmp.ge.f32.partialorder %v2168_v10, 0.0 }
 0x59a   : > { %v2269_v58 = vsel %vm2205_vm13, %v2168_v10, %v2237_v11 }
 0x59b   : > { %v2301_v13 = vmul.f32 %v2269_v58, %v4906_v52 }
 0x59d   : > { %v2169_v46 = vpop.f32.mrf.mxu1  ;;  %v2337_v44 = vadd.f32 %v2336_v28, %v2301_v13 }
 0x59e   : > { %v2170_v35 = vadd.f32 %v4476_v21, %v2169_v46 }
 0x5a0   : > { %v2238_v8 = vmul.f32 0.01, %v2170_v35  ;;  %vm2206_vm14 = vcmp.ge.f32.partialorder %v2170_v35, 0.0 }
 0x5a2   : > { %v2270_v39 = vsel %vm2206_vm14, %v2170_v35, %v2238_v8 }
 0x5a3   : > { %v2302_v9 = vmul.f32 %v2270_v39, %v4908_v54  ;;  %v2325_v54 = vadd.f32 %v2324_v20, %v2323_v43 }
 0x5a5   : > { %v2172_v25 = vpop.f32.mrf.mxu1  ;;  %v2338_v37 = vadd.f32 %v2337_v44, %v2302_v9  ;;  %v2436_v59 = vmul.f32 %v2429_v3, %v2325_v54 }
 0x5a6   : > { %v2173_v36 = vadd.f32 %v4476_v21, %v2172_v25 }
 0x5a7   : > { %v2438_v46 = vpack.c.bf16 %v2436_v59, %v2436_v59 }
 0x5a8   : > { %v2239_v50 = vmul.f32 0.01, %v2173_v36  ;;  %vm2207_vm15 = vcmp.ge.f32.partialorder %v2173_v36, 0.0 }
 0x5a9   : > { %v2462_v30 = vunpack.c.l.b16 %v2438_v46 }
 0x5aa   : > { %v2271_v19 = vsel %vm2207_vm15, %v2173_v36, %v2239_v50 }
 0x5ab   : > { %v2303_v6 = vmul.f32 %v2271_v19, %v4912_v63 }
 0x5ad   : > { %v2174_v5 = vpop.f32.mrf.mxu1  ;;  %v2339_v49 = vadd.f32 %v2338_v37, %v2303_v6 }
 0x5ae   : > { %v2175_v60 = vadd.f32 %v4476_v21, %v2174_v5 }
 0x5b0   : > { %vm2208_vm0 = vcmp.ge.f32.partialorder %v2175_v60, 0.0  ;;  %v2240_v29 = vmul.f32 0.01, %v2175_v60 }
 0x5b2   : > { %v2272_v56 = vsel %vm2208_vm0, %v2175_v60, %v2240_v29 }
 0x5b3   : > { %v2304_v7 = vmul.f32 %v2272_v56, %v4914_v53 }
 0x5b5   : > { %v2340_v52 = vadd.f32 %v2339_v49, %v2304_v7 }
 0x5b7   : > { %v2341_v0 = vrot.slane %v2340_v52, 4 }
 0x5b9   : > { %v2342_v15 = vadd.f32 %v2341_v0, %v2340_v52 }
 0x5bb   : > { %v2343_v61 = vrot.slane %v2342_v15, 2 }
 0x5bd   : > { %v2344_v21 = vadd.f32 %v2343_v61, %v2342_v15 }
 0x5bf   : > { %v2345_v63 = vrot.slane %v2344_v21, 1 }
 0x5c1   : > { %v2346_v12 = vadd.f32 %v2345_v63, %v2344_v21 }
 0x5c3   : > { %v2437_v55 = vmul.f32 %v2434_v17, %v2346_v12 }
 0x5c5   : > { %v2439_v45 = vpack.c.bf16 %v2437_v55, %v2437_v55 }
 0x5c7   : > { %v2463_v53 = vunpack.c.l.b16 %v2439_v45 }
 0x5c9   : > { %v2465_v51 = vsel %vm2464_vm1, %v2463_v53, %v2462_v30 }
 0x5ca   : > { %v2466_v48 = vpack.c.b16 %v2465_v51, %v2465_v51 }
 0x5cc   : > { %2524 = vmatmul.bf16.vlgmr.msrb.gmra.mxu3 %v2466_v48 }
 0x64f   : > { %v2525_v62 = vpop.f32.mrf.mxu3 }
 0x650   : > { %v2526_v10 = vadd.f32 %v3155_v38, %v2525_v62 }
 0x652   : > { %2529 = vst [vmem:[%s458_s25] sm:$0x3] %v2526_v10 }
 0x653   : > { %3307 = shalt.err (!%p3304_p8)
}
 0x654   : > { %3083 = dma.vmem_to_hbm [thread:$0]  (%p3456_p5), %s2544_s11, 32, %s2546_s12, %s2531_s21  }
 0x657   : > { %v2527_v23 = vpop.f32.mrf.mxu3 }
 0x658 PF: > { %p3110_p9 = scmp.ge.s32.totalorder %s3354_s16, 2  ;;  %s2557_s5 = sand.u32 1, %s3342_s13  }
 0x659   : > { %s2558_s15 = scalar_lea.sflag [#allocation4], %s2557_s5 }
 0x65a   : > { %p3099_p10 = pnand %p3110_p9, %p3460_p6 }
 0x65c   : > { %p3100_p11 = pneg %p3099_p10 }
 0x65e   : > { %3337 = dma.done.wait (%p3100_p11), %s2558_s15, 32  }
 0x65f   : > { %3339 = vsyncadd (%p3100_p11), %s2558_s15, 4294967264  ;;  %s4918_s16 = sld [smem:[#allocation16_spill]]  ;;  %s4921_s13 = smov %s3346_s14 }
 0x660   : > { %s4919_s19 = sld [smem:[#allocation15_spill]] }
 0x661   : > { %s4920_s15 = sld [smem:[#allocation17_spill]] }
 0x665   : > { %p23_p12 = scmp.ge.s32.totalorder %s4918_s16, 4  }
 0x666   : > { %s4922_s14 = smov %s4919_s19 }
 0x667   :  { %25 = sbr.rel (!%p23_p12) target bundleno = 9 (0x9), region = 119 }
 0x66c   :  { %2564 = vsyncpa [#allocation3], 1 }
 0x66d   :  { %2566 = vsyncpa [#allocation3 + $0x1], 1 }
 0x66e   :  { %2567 = vsyncpa [#allocation6], 1 }
 0x66f   :  { %2568 = vsyncpa [#allocation9], 1 }
 0x670   :  { %2569 = vsyncpa [#allocation4], 1 }
 0x671   :  { %2571 = vsyncpa [#allocation4 + $0x1], 1 }

</bundles_post_ra>
